<compile_context>
chip_gen: v7x
topology: tpu7x:2x2x1
jax: 0.10.0
libtpu: 0.0.40
codegen_flags: <defaults>
</compile_context>

<pallas_src>
import jax
import jax.numpy as jnp
from jax import lax
from jax.experimental import pallas as pl
from jax.experimental.pallas import tpu as pltpu  # noqa: F401  (TPU tuning hooks)


# ----------------------------------------------------------------------------
# Fused Pallas kernel: wavefronted LSTM stack recurrence + final Linear
# ----------------------------------------------------------------------------
def _make_lstm_head_kernel(T, N, H, num_layers, C_pad):
    """Builds the fused kernel for fixed (T, N, H, num_layers, C_pad).

    Refs passed by pallas_call:
      xw0    [T*N, 4H]  f32   layer-0 pre-projected gates (x @ Wih0 + b0)
      wslab  [(2L-1)*H, 4H] bf16  rows: whh0 | (wih_l, whh_l) for l=1..L-1
      pslab  [8*(L-1)+H+8, W] f32 rows: per-upper-layer bias (8-row blocks,
                                  row 0 valid) | w_out (H rows) | b_out (1 row)
      out    [N, C_pad]  f32
    Gate column order inside the kernel is (i, f, o, g).
    """
    G = 4 * H

    def cell(gates, c):
        # Full-width activations on the 4H-lane gate vreg (EUP slot); the
        # unused lanes are free.  Slice only for the combine.
        sig = jax.nn.sigmoid(gates)          # [N, 4H]
        tg = jnp.tanh(gates)                 # [N, 4H]
        i_g = sig[:, :H]
        f_g = sig[:, H:2 * H]
        o_g = sig[:, 2 * H:3 * H]
        g_g = tg[:, 3 * H:]
        c_new = f_g * c + i_g * g_g
        h_new = o_g * jnp.tanh(c_new)
        return h_new, c_new

    def kernel(xw0_ref, wslab_ref, pslab_ref, out_ref):
        bf16 = jnp.bfloat16
        f32 = jnp.float32

        # ---- unpack the packed weight slabs once (values reused in vregs) --
        whh0 = wslab_ref[0:H, :]                                  # bf16 [H, 4H]
        upper = []
        for l in range(num_layers - 1):
            base = H + 2 * l * H
            wih = wslab_ref[base:base + H, :]                     # bf16 [H, 4H]
            whh = wslab_ref[base + H:base + 2 * H, :]             # bf16 [H, 4H]
            b = pslab_ref[8 * l:8 * l + 1, :G]                    # f32  [1, 4H]
            upper.append((wih, whh, b))
        wo_base = 8 * (num_layers - 1)
        w_out = pslab_ref[wo_base:wo_base + H, :C_pad]            # f32 [H, C_pad]
        b_out = pslab_ref[wo_base + H:wo_base + H + 1, :C_pad]    # f32 [1, C_pad]

        # ---- wavefronted recurrence: all layers inside one unrolled t-loop -
        hs = [jnp.zeros((N, H), f32) for _ in range(num_layers)]
        cs = [jnp.zeros((N, H), f32) for _ in range(num_layers)]
        for t in range(T):                       # static unroll (T small, fixed)
            gates = xw0_ref[t * N:(t + 1) * N, :] + jnp.dot(
                hs[0].astype(bf16), whh0, preferred_element_type=f32)
            hs[0], cs[0] = cell(gates, cs[0])
            x_l = hs[0]
            for l in range(1, num_layers):
                wih, whh, b = upper[l - 1]
                gates = (
                    jnp.dot(x_l.astype(bf16), wih, preferred_element_type=f32)
                    + b
                    + jnp.dot(hs[l].astype(bf16), whh, preferred_element_type=f32))
                hs[l], cs[l] = cell(gates, cs[l])
                x_l = hs[l]

        # ---- final Linear on the last hidden step (dropout = identity) -----
        out_ref[...] = (
            jnp.dot(hs[-1], w_out, preferred_element_type=f32) + b_out
        ).astype(out_ref.dtype)

    return kernel


def _full_spec(arr):
    zeros = (0,) * arr.ndim
    return pl.BlockSpec(arr.shape, lambda: zeros)


def lstm_head(xw0, wslab, pslab, T, N, H, num_layers, C_pad):
    """Fused pallas_call: LSTM stack (layer-0 projection precomputed) + Linear."""
    return pl.pallas_call(
        _make_lstm_head_kernel(T, N, H, num_layers, C_pad),
        out_shape=jax.ShapeDtypeStruct((N, C_pad), jnp.float32),
        in_specs=[_full_spec(xw0), _full_spec(wslab), _full_spec(pslab)],
        out_specs=pl.BlockSpec((N, C_pad), lambda: (0, 0)),
    )(xw0, wslab, pslab)


# ----------------------------------------------------------------------------
# Forward-pass wrappers (match the PyTorch module semantics)
# ----------------------------------------------------------------------------
def f(data, prep):
    """Equivalent of LSTM.f(x): squeeze(1) -> permute -> LSTM -> last step
    -> dropout (identity at inference) -> linear.  The layer-0 input
    projection is fused into the transpose via a single XLA einsum, and the
    batch is padded to a multiple of 8 sublanes before the kernel."""
    x = data[:, 0]                                   # squeeze(1): [N, F, T]
    N = x.shape[0]
    N_pad = max(8, ((N + 7) // 8) * 8)
    if N_pad != N:
        x = jnp.pad(x, ((0, N_pad - N), (0, 0), (0, 0)))
    # time-major projected gates in one op: [T, N_pad, 4H]
    xw0 = jnp.einsum("nft,fg->tng", x, prep["wih0"]) + prep["b0"]
    T = xw0.shape[0]
    xw0 = xw0.reshape(T * N_pad, 4 * prep["H"])
    logits = lstm_head(xw0, prep["wslab"], prep["pslab"], T, N_pad,
                       prep["H"], prep["num_layers"], prep["C_pad"])
    return logits[:N, :prep["C"]]


def lstm_forward(inputs, prep):
    """Equivalent of LSTM.forward for the data paths.  All present data paths
    are batched along N into a single fused kernel invocation."""
    paths = [("data", "target"), ("aug_data", "aug_target"),
             ("mix_data", "mix_target")]
    present = [(k, o) for k, o in paths if k in inputs]
    output = {}
    if not present:
        return output
    datas = [inputs[k] for k, _ in present]
    sizes = [d.shape[0] for d in datas]
    logits = f(jnp.concatenate(datas, axis=0), prep)
    off = 0
    for (_, o), n in zip(present, sizes):
        output[o] = logits[off:off + n]
        off += n
    # TODO(synk): make_loss() is not defined in the reference module; loss omitted.
    return output


# ----------------------------------------------------------------------------
# Parameters: PyTorch-layout init + kernel-layout preparation
# ----------------------------------------------------------------------------
def init_params(key, input_size, hidden_size, num_layers, target_size):
    """PyTorch default init U(-1/sqrt(H), 1/sqrt(H)); weights stored transposed
    ([D_in, 4H], [H, 4H]) with PyTorch gate order (i, f, g, o)."""
    k = 1.0 / jnp.sqrt(jnp.float32(hidden_size))
    params = {"lstm": []}
    for layer in range(num_layers):
        d_in = input_size if layer == 0 else hidden_size
        key, k1, k2, k3, k4 = jax.random.split(key, 5)
        wih = jax.random.uniform(k1, (d_in, 4 * hidden_size), jnp.float32, -k, k)
        whh = jax.random.uniform(k2, (hidden_size, 4 * hidden_size), jnp.float32, -k, k)
        b_ih = jax.random.uniform(k3, (4 * hidden_size,), jnp.float32, -k, k)
        b_hh = jax.random.uniform(k4, (4 * hidden_size,), jnp.float32, -k, k)
        params["lstm"].append({"wih": wih, "whh": whh, "b": (b_ih + b_hh)[None, :]})
    key, k5, k6 = jax.random.split(key, 3)
    params["w_out"] = jax.random.uniform(k5, (hidden_size, target_size),
                                         jnp.float32, -k, k)
    params["b_out"] = jax.random.uniform(k6, (1, target_size), jnp.float32, -k, k)
    return params


def _reorder_gates(w, H, axis=-1):
    """Permute gate blocks (i, f, g, o) -> (i, f, o, g) along the 4H axis so the
    sigmoid gates occupy contiguous lanes in the kernel."""
    i, f_, g, o = jnp.split(w, 4, axis=axis)
    return jnp.concatenate([i, f_, o, g], axis=axis)


def prepare_params(params):
    """One-time repack of PyTorch-layout params into the kernel layout:
    layer-0 input projection weights stay f32 (used by XLA einsum); the
    recurrent / upper-layer weights are packed into one bf16 slab; the upper
    biases, output weight and output bias into one f32 slab."""
    H = params["lstm"][0]["whh"].shape[0]
    num_layers = len(params["lstm"])
    C = params["w_out"].shape[1]
    C_pad = max(128, ((C + 127) // 128) * 128)
    G = 4 * H
    W = max(G, C_pad)

    l0 = params["lstm"][0]
    wih0 = _reorder_gates(l0["wih"], H)
    b0 = _reorder_gates(l0["b"], H)                 # [1, 4H], broadcasts vs [T,N,4H]

    # bf16 weight slab: whh0 | (wih_l, whh_l) per upper layer, width 4H.
    w_rows = [_reorder_gates(l0["whh"], H)]
    for layer in params["lstm"][1:]:
        w_rows.append(_reorder_gates(layer["wih"], H))
        w_rows.append(_reorder_gates(layer["whh"], H))
    wslab = jnp.concatenate(w_rows, axis=0).astype(jnp.bfloat16)

    # f32 param slab: per-upper-layer bias (8-row blocks) | w_out | b_out.
    p_rows = []
    for layer in params["lstm"][1:]:
        b = _reorder_gates(layer["b"], H)           # [1, 4H]
        blk = jnp.zeros((8, W), jnp.float32).at[0, :G].set(b[0])
        p_rows.append(blk)
    wo = jnp.zeros((H, W), jnp.float32).at[:, :C].set(params["w_out"])
    p_rows.append(wo)
    bo = jnp.zeros((8, W), jnp.float32).at[0, :C].set(params["b_out"][0])
    p_rows.append(bo)
    pslab = jnp.concatenate(p_rows, axis=0)

    return {"wih0": wih0, "b0": b0, "wslab": wslab, "pslab": pslab,
            "H": H, "num_layers": num_layers, "C": C, "C_pad": C_pad}


# ----------------------------------------------------------------------------
# Pure-JAX reference (PyTorch gate order, full f32) for correctness checking
# ----------------------------------------------------------------------------
def lstm_reference(data, params):
    x = jnp.transpose(data[:, 0], (0, 2, 1))        # [N, T, F]
    H = params["lstm"][0]["whh"].shape[0]
    for layer in params["lstm"]:
        wih, whh, b = layer["wih"], layer["whh"], layer["b"]

        def step(carry, xt, wih=wih, whh=whh, b=b):
            h, c = carry
            gates = xt @ wih + h @ whh + b[0]
            i = jax.nn.sigmoid(gates[:, :H])
            f_ = jax.nn.sigmoid(gates[:, H:2 * H])
            g = jnp.tanh(gates[:, 2 * H:3 * H])
            o = jax.nn.sigmoid(gates[:, 3 * H:])
            c = f_ * c + i * g
            h = o * jnp.tanh(c)
            return (h, c), h

        N = x.shape[0]
        init = (jnp.zeros((N, H), jnp.float32), jnp.zeros((N, H), jnp.float32))
        _, hseq = lax.scan(step, init, jnp.transpose(x, (1, 0, 2)))
        x = jnp.transpose(hseq, (1, 0, 2))
    return x[:, -1] @ params["w_out"] + params["b_out"]


# ----------------------------------------------------------------------------
if __name__ == "__main__":
    # Small shapes implied by the module: data_shape = (1, F, T)
    batch = 2
    F = 16          # data_shape[1] -> LSTM input_size
    T = 8           # sequence length
    hidden_size = 32
    num_layers = 2
    target_size = 10

    key = jax.random.PRNGKey(0)
    key, kd, kp = jax.random.split(key, 3)

    data = jax.random.normal(kd, (batch, 1, F, T), dtype=jnp.float32)
    params = init_params(kp, F, hidden_size, num_layers, target_size)
    prep = prepare_params(params)

    out = lstm_forward({"data": data}, prep)
    jax.block_until_ready(out["target"])
    assert out["target"].shape == (batch, target_size)

    # Cross-check the fused kernel against a pure-f32 JAX reference.  The
    # kernel uses bf16 recurrent weights (f32 accumulation), so the tolerance
    # is looser than a pure-f32 comparison would need.
    ref = lstm_reference(data, params)
    assert jnp.allclose(out["target"], ref, atol=5e-2, rtol=5e-2), (
        "kernel/reference mismatch")

    print("KERNEL_OK")
</pallas_src>

<mosaic_0001>
module attributes {stable_mosaic.version = 11 : i64} {
  func.func @kernel(%arg0: memref<64x128xf32, #tpu.memory_space<vmem>>, %arg1: memref<96x128xbf16, #tpu.memory_space<vmem>>, %arg2: memref<48x128xf32, #tpu.memory_space<vmem>>, %arg3: memref<8x128xf32, #tpu.memory_space<vmem>>) attributes {dimension_semantics = [], scalar_prefetch = 0 : i64, scratch_operands = 0 : i64, tpu.core_type = #tpu.core_type<tc>} {
    %c0 = arith.constant 0 : index
    %c0_0 = arith.constant 0 : index
    %0 = vector.load %arg1[%c0, %c0_0] : memref<96x128xbf16, #tpu.memory_space<vmem>>, vector<32x128xbf16>
    %c32 = arith.constant 32 : index
    %c0_1 = arith.constant 0 : index
    %1 = vector.load %arg1[%c32, %c0_1] : memref<96x128xbf16, #tpu.memory_space<vmem>>, vector<32x128xbf16>
    %c64 = arith.constant 64 : index
    %c0_2 = arith.constant 0 : index
    %2 = vector.load %arg1[%c64, %c0_2] : memref<96x128xbf16, #tpu.memory_space<vmem>>, vector<32x128xbf16>
    %c0_3 = arith.constant 0 : index
    %c0_4 = arith.constant 0 : index
    %3 = vector.load %arg2[%c0_3, %c0_4] : memref<48x128xf32, #tpu.memory_space<vmem>>, vector<1x128xf32>
    %c8 = arith.constant 8 : index
    %c0_5 = arith.constant 0 : index
    %4 = vector.load %arg2[%c8, %c0_5] : memref<48x128xf32, #tpu.memory_space<vmem>>, vector<32x128xf32>
    %c40 = arith.constant 40 : index
    %c0_6 = arith.constant 0 : index
    %5 = vector.load %arg2[%c40, %c0_6] : memref<48x128xf32, #tpu.memory_space<vmem>>, vector<1x128xf32>
    %cst = arith.constant 0.000000e+00 : f32
    %6 = vector.broadcast %cst : f32 to vector<8x32xf32>
    %cst_7 = arith.constant 0.000000e+00 : f32
    %7 = vector.broadcast %cst_7 : f32 to vector<8x32xf32>
    %cst_8 = arith.constant 0.000000e+00 : f32
    %8 = vector.broadcast %cst_8 : f32 to vector<8x32xf32>
    %cst_9 = arith.constant 0.000000e+00 : f32
    %9 = vector.broadcast %cst_9 : f32 to vector<8x32xf32>
    %c0_10 = arith.constant 0 : index
    %c0_11 = arith.constant 0 : index
    %10 = vector.load %arg0[%c0_10, %c0_11] : memref<64x128xf32, #tpu.memory_space<vmem>>, vector<8x128xf32>
    %11 = arith.truncf %6 : vector<8x32xf32> to vector<8x32xbf16>
    %cst_12 = arith.constant dense<0.000000e+00> : vector<8x128xf32>
    %12 = tpu.matmul %11, %0, %cst_12 {dimension_numbers = #tpu.dot_dimension_numbers<[1], [0], [0], [1], [0, 0, 1, 1], [], []>} : vector<8x32xbf16>, vector<32x128xbf16>, vector<8x128xf32> -> vector<8x128xf32>
    %13 = arith.addf %10, %12 : vector<8x128xf32>
    %14 = arith.negf %13 : vector<8x128xf32>
    %15 = math.exp %14 : vector<8x128xf32>
    %cst_13 = arith.constant 1.000000e+00 : f32
    %16 = vector.broadcast %cst_13 : f32 to vector<8x128xf32>
    %17 = arith.addf %16, %15 : vector<8x128xf32>
    %18 = arith.divf %16, %17 : vector<8x128xf32>
    %19 = math.tanh %13 : vector<8x128xf32>
    %20 = vector.extract_strided_slice %18 {offsets = [0, 0], sizes = [8, 32], strides = [1, 1]} : vector<8x128xf32> to vector<8x32xf32>
    %21 = vector.extract_strided_slice %18 {offsets = [0, 32], sizes = [8, 32], strides = [1, 1]} : vector<8x128xf32> to vector<8x32xf32>
    %22 = vector.extract_strided_slice %18 {offsets = [0, 64], sizes = [8, 32], strides = [1, 1]} : vector<8x128xf32> to vector<8x32xf32>
    %23 = vector.extract_strided_slice %19 {offsets = [0, 96], sizes = [8, 32], strides = [1, 1]} : vector<8x128xf32> to vector<8x32xf32>
    %24 = arith.mulf %21, %8 : vector<8x32xf32>
    %25 = arith.mulf %20, %23 : vector<8x32xf32>
    %26 = arith.addf %24, %25 : vector<8x32xf32>
    %27 = math.tanh %26 : vector<8x32xf32>
    %28 = arith.mulf %22, %27 : vector<8x32xf32>
    %29 = arith.truncf %28 : vector<8x32xf32> to vector<8x32xbf16>
    %cst_14 = arith.constant dense<0.000000e+00> : vector<8x128xf32>
    %30 = tpu.matmul %29, %1, %cst_14 {dimension_numbers = #tpu.dot_dimension_numbers<[1], [0], [0], [1], [0, 0, 1, 1], [], []>} : vector<8x32xbf16>, vector<32x128xbf16>, vector<8x128xf32> -> vector<8x128xf32>
    %31 = vector.broadcast %3 : vector<1x128xf32> to vector<8x128xf32>
    %32 = arith.addf %30, %31 : vector<8x128xf32>
    %33 = arith.truncf %7 : vector<8x32xf32> to vector<8x32xbf16>
    %cst_15 = arith.constant dense<0.000000e+00> : vector<8x128xf32>
    %34 = tpu.matmul %33, %2, %cst_15 {dimension_numbers = #tpu.dot_dimension_numbers<[1], [0], [0], [1], [0, 0, 1, 1], [], []>} : vector<8x32xbf16>, vector<32x128xbf16>, vector<8x128xf32> -> vector<8x128xf32>
    %35 = arith.addf %32, %34 : vector<8x128xf32>
    %36 = arith.negf %35 : vector<8x128xf32>
    %37 = math.exp %36 : vector<8x128xf32>
    %cst_16 = arith.constant 1.000000e+00 : f32
    %38 = vector.broadcast %cst_16 : f32 to vector<8x128xf32>
    %39 = arith.addf %38, %37 : vector<8x128xf32>
    %40 = arith.divf %38, %39 : vector<8x128xf32>
    %41 = math.tanh %35 : vector<8x128xf32>
    %42 = vector.extract_strided_slice %40 {offsets = [0, 0], sizes = [8, 32], strides = [1, 1]} : vector<8x128xf32> to vector<8x32xf32>
    %43 = vector.extract_strided_slice %40 {offsets = [0, 32], sizes = [8, 32], strides = [1, 1]} : vector<8x128xf32> to vector<8x32xf32>
    %44 = vector.extract_strided_slice %40 {offsets = [0, 64], sizes = [8, 32], strides = [1, 1]} : vector<8x128xf32> to vector<8x32xf32>
    %45 = vector.extract_strided_slice %41 {offsets = [0, 96], sizes = [8, 32], strides = [1, 1]} : vector<8x128xf32> to vector<8x32xf32>
    %46 = arith.mulf %43, %9 : vector<8x32xf32>
    %47 = arith.mulf %42, %45 : vector<8x32xf32>
    %48 = arith.addf %46, %47 : vector<8x32xf32>
    %49 = math.tanh %48 : vector<8x32xf32>
    %50 = arith.mulf %44, %49 : vector<8x32xf32>
    %c8_17 = arith.constant 8 : index
    %c0_18 = arith.constant 0 : index
    %51 = vector.load %arg0[%c8_17, %c0_18] : memref<64x128xf32, #tpu.memory_space<vmem>>, vector<8x128xf32>
    %52 = arith.truncf %28 : vector<8x32xf32> to vector<8x32xbf16>
    %cst_19 = arith.constant dense<0.000000e+00> : vector<8x128xf32>
    %53 = tpu.matmul %52, %0, %cst_19 {dimension_numbers = #tpu.dot_dimension_numbers<[1], [0], [0], [1], [0, 0, 1, 1], [], []>} : vector<8x32xbf16>, vector<32x128xbf16>, vector<8x128xf32> -> vector<8x128xf32>
    %54 = arith.addf %51, %53 : vector<8x128xf32>
    %55 = arith.negf %54 : vector<8x128xf32>
    %56 = math.exp %55 : vector<8x128xf32>
    %cst_20 = arith.constant 1.000000e+00 : f32
    %57 = vector.broadcast %cst_20 : f32 to vector<8x128xf32>
    %58 = arith.addf %57, %56 : vector<8x128xf32>
    %59 = arith.divf %57, %58 : vector<8x128xf32>
    %60 = math.tanh %54 : vector<8x128xf32>
    %61 = vector.extract_strided_slice %59 {offsets = [0, 0], sizes = [8, 32], strides = [1, 1]} : vector<8x128xf32> to vector<8x32xf32>
    %62 = vector.extract_strided_slice %59 {offsets = [0, 32], sizes = [8, 32], strides = [1, 1]} : vector<8x128xf32> to vector<8x32xf32>
    %63 = vector.extract_strided_slice %59 {offsets = [0, 64], sizes = [8, 32], strides = [1, 1]} : vector<8x128xf32> to vector<8x32xf32>
    %64 = vector.extract_strided_slice %60 {offsets = [0, 96], sizes = [8, 32], strides = [1, 1]} : vector<8x128xf32> to vector<8x32xf32>
    %65 = arith.mulf %62, %26 : vector<8x32xf32>
    %66 = arith.mulf %61, %64 : vector<8x32xf32>
    %67 = arith.addf %65, %66 : vector<8x32xf32>
    %68 = math.tanh %67 : vector<8x32xf32>
    %69 = arith.mulf %63, %68 : vector<8x32xf32>
    %70 = arith.truncf %69 : vector<8x32xf32> to vector<8x32xbf16>
    %cst_21 = arith.constant dense<0.000000e+00> : vector<8x128xf32>
    %71 = tpu.matmul %70, %1, %cst_21 {dimension_numbers = #tpu.dot_dimension_numbers<[1], [0], [0], [1], [0, 0, 1, 1], [], []>} : vector<8x32xbf16>, vector<32x128xbf16>, vector<8x128xf32> -> vector<8x128xf32>
    %72 = vector.broadcast %3 : vector<1x128xf32> to vector<8x128xf32>
    %73 = arith.addf %71, %72 : vector<8x128xf32>
    %74 = arith.truncf %50 : vector<8x32xf32> to vector<8x32xbf16>
    %cst_22 = arith.constant dense<0.000000e+00> : vector<8x128xf32>
    %75 = tpu.matmul %74, %2, %cst_22 {dimension_numbers = #tpu.dot_dimension_numbers<[1], [0], [0], [1], [0, 0, 1, 1], [], []>} : vector<8x32xbf16>, vector<32x128xbf16>, vector<8x128xf32> -> vector<8x128xf32>
    %76 = arith.addf %73, %75 : vector<8x128xf32>
    %77 = arith.negf %76 : vector<8x128xf32>
    %78 = math.exp %77 : vector<8x128xf32>
    %cst_23 = arith.constant 1.000000e+00 : f32
    %79 = vector.broadcast %cst_23 : f32 to vector<8x128xf32>
    %80 = arith.addf %79, %78 : vector<8x128xf32>
    %81 = arith.divf %79, %80 : vector<8x128xf32>
    %82 = math.tanh %76 : vector<8x128xf32>
    %83 = vector.extract_strided_slice %81 {offsets = [0, 0], sizes = [8, 32], strides = [1, 1]} : vector<8x128xf32> to vector<8x32xf32>
    %84 = vector.extract_strided_slice %81 {offsets = [0, 32], sizes = [8, 32], strides = [1, 1]} : vector<8x128xf32> to vector<8x32xf32>
    %85 = vector.extract_strided_slice %81 {offsets = [0, 64], sizes = [8, 32], strides = [1, 1]} : vector<8x128xf32> to vector<8x32xf32>
    %86 = vector.extract_strided_slice %82 {offsets = [0, 96], sizes = [8, 32], strides = [1, 1]} : vector<8x128xf32> to vector<8x32xf32>
    %87 = arith.mulf %84, %48 : vector<8x32xf32>
    %88 = arith.mulf %83, %86 : vector<8x32xf32>
    %89 = arith.addf %87, %88 : vector<8x32xf32>
    %90 = math.tanh %89 : vector<8x32xf32>
    %91 = arith.mulf %85, %90 : vector<8x32xf32>
    %c16 = arith.constant 16 : index
    %c0_24 = arith.constant 0 : index
    %92 = vector.load %arg0[%c16, %c0_24] : memref<64x128xf32, #tpu.memory_space<vmem>>, vector<8x128xf32>
    %93 = arith.truncf %69 : vector<8x32xf32> to vector<8x32xbf16>
    %cst_25 = arith.constant dense<0.000000e+00> : vector<8x128xf32>
    %94 = tpu.matmul %93, %0, %cst_25 {dimension_numbers = #tpu.dot_dimension_numbers<[1], [0], [0], [1], [0, 0, 1, 1], [], []>} : vector<8x32xbf16>, vector<32x128xbf16>, vector<8x128xf32> -> vector<8x128xf32>
    %95 = arith.addf %92, %94 : vector<8x128xf32>
    %96 = arith.negf %95 : vector<8x128xf32>
    %97 = math.exp %96 : vector<8x128xf32>
    %cst_26 = arith.constant 1.000000e+00 : f32
    %98 = vector.broadcast %cst_26 : f32 to vector<8x128xf32>
    %99 = arith.addf %98, %97 : vector<8x128xf32>
    %100 = arith.divf %98, %99 : vector<8x128xf32>
    %101 = math.tanh %95 : vector<8x128xf32>
    %102 = vector.extract_strided_slice %100 {offsets = [0, 0], sizes = [8, 32], strides = [1, 1]} : vector<8x128xf32> to vector<8x32xf32>
    %103 = vector.extract_strided_slice %100 {offsets = [0, 32], sizes = [8, 32], strides = [1, 1]} : vector<8x128xf32> to vector<8x32xf32>
    %104 = vector.extract_strided_slice %100 {offsets = [0, 64], sizes = [8, 32], strides = [1, 1]} : vector<8x128xf32> to vector<8x32xf32>
    %105 = vector.extract_strided_slice %101 {offsets = [0, 96], sizes = [8, 32], strides = [1, 1]} : vector<8x128xf32> to vector<8x32xf32>
    %106 = arith.mulf %103, %67 : vector<8x32xf32>
    %107 = arith.mulf %102, %105 : vector<8x32xf32>
    %108 = arith.addf %106, %107 : vector<8x32xf32>
    %109 = math.tanh %108 : vector<8x32xf32>
    %110 = arith.mulf %104, %109 : vector<8x32xf32>
    %111 = arith.truncf %110 : vector<8x32xf32> to vector<8x32xbf16>
    %cst_27 = arith.constant dense<0.000000e+00> : vector<8x128xf32>
    %112 = tpu.matmul %111, %1, %cst_27 {dimension_numbers = #tpu.dot_dimension_numbers<[1], [0], [0], [1], [0, 0, 1, 1], [], []>} : vector<8x32xbf16>, vector<32x128xbf16>, vector<8x128xf32> -> vector<8x128xf32>
    %113 = vector.broadcast %3 : vector<1x128xf32> to vector<8x128xf32>
    %114 = arith.addf %112, %113 : vector<8x128xf32>
    %115 = arith.truncf %91 : vector<8x32xf32> to vector<8x32xbf16>
    %cst_28 = arith.constant dense<0.000000e+00> : vector<8x128xf32>
    %116 = tpu.matmul %115, %2, %cst_28 {dimension_numbers = #tpu.dot_dimension_numbers<[1], [0], [0], [1], [0, 0, 1, 1], [], []>} : vector<8x32xbf16>, vector<32x128xbf16>, vector<8x128xf32> -> vector<8x128xf32>
    %117 = arith.addf %114, %116 : vector<8x128xf32>
    %118 = arith.negf %117 : vector<8x128xf32>
    %119 = math.exp %118 : vector<8x128xf32>
    %cst_29 = arith.constant 1.000000e+00 : f32
    %120 = vector.broadcast %cst_29 : f32 to vector<8x128xf32>
    %121 = arith.addf %120, %119 : vector<8x128xf32>
    %122 = arith.divf %120, %121 : vector<8x128xf32>
    %123 = math.tanh %117 : vector<8x128xf32>
    %124 = vector.extract_strided_slice %122 {offsets = [0, 0], sizes = [8, 32], strides = [1, 1]} : vector<8x128xf32> to vector<8x32xf32>
    %125 = vector.extract_strided_slice %122 {offsets = [0, 32], sizes = [8, 32], strides = [1, 1]} : vector<8x128xf32> to vector<8x32xf32>
    %126 = vector.extract_strided_slice %122 {offsets = [0, 64], sizes = [8, 32], strides = [1, 1]} : vector<8x128xf32> to vector<8x32xf32>
    %127 = vector.extract_strided_slice %123 {offsets = [0, 96], sizes = [8, 32], strides = [1, 1]} : vector<8x128xf32> to vector<8x32xf32>
    %128 = arith.mulf %125, %89 : vector<8x32xf32>
    %129 = arith.mulf %124, %127 : vector<8x32xf32>
    %130 = arith.addf %128, %129 : vector<8x32xf32>
    %131 = math.tanh %130 : vector<8x32xf32>
    %132 = arith.mulf %126, %131 : vector<8x32xf32>
    %c24 = arith.constant 24 : index
    %c0_30 = arith.constant 0 : index
    %133 = vector.load %arg0[%c24, %c0_30] : memref<64x128xf32, #tpu.memory_space<vmem>>, vector<8x128xf32>
    %134 = arith.truncf %110 : vector<8x32xf32> to vector<8x32xbf16>
    %cst_31 = arith.constant dense<0.000000e+00> : vector<8x128xf32>
    %135 = tpu.matmul %134, %0, %cst_31 {dimension_numbers = #tpu.dot_dimension_numbers<[1], [0], [0], [1], [0, 0, 1, 1], [], []>} : vector<8x32xbf16>, vector<32x128xbf16>, vector<8x128xf32> -> vector<8x128xf32>
    %136 = arith.addf %133, %135 : vector<8x128xf32>
    %137 = arith.negf %136 : vector<8x128xf32>
    %138 = math.exp %137 : vector<8x128xf32>
    %cst_32 = arith.constant 1.000000e+00 : f32
    %139 = vector.broadcast %cst_32 : f32 to vector<8x128xf32>
    %140 = arith.addf %139, %138 : vector<8x128xf32>
    %141 = arith.divf %139, %140 : vector<8x128xf32>
    %142 = math.tanh %136 : vector<8x128xf32>
    %143 = vector.extract_strided_slice %141 {offsets = [0, 0], sizes = [8, 32], strides = [1, 1]} : vector<8x128xf32> to vector<8x32xf32>
    %144 = vector.extract_strided_slice %141 {offsets = [0, 32], sizes = [8, 32], strides = [1, 1]} : vector<8x128xf32> to vector<8x32xf32>
    %145 = vector.extract_strided_slice %141 {offsets = [0, 64], sizes = [8, 32], strides = [1, 1]} : vector<8x128xf32> to vector<8x32xf32>
    %146 = vector.extract_strided_slice %142 {offsets = [0, 96], sizes = [8, 32], strides = [1, 1]} : vector<8x128xf32> to vector<8x32xf32>
    %147 = arith.mulf %144, %108 : vector<8x32xf32>
    %148 = arith.mulf %143, %146 : vector<8x32xf32>
    %149 = arith.addf %147, %148 : vector<8x32xf32>
    %150 = math.tanh %149 : vector<8x32xf32>
    %151 = arith.mulf %145, %150 : vector<8x32xf32>
    %152 = arith.truncf %151 : vector<8x32xf32> to vector<8x32xbf16>
    %cst_33 = arith.constant dense<0.000000e+00> : vector<8x128xf32>
    %153 = tpu.matmul %152, %1, %cst_33 {dimension_numbers = #tpu.dot_dimension_numbers<[1], [0], [0], [1], [0, 0, 1, 1], [], []>} : vector<8x32xbf16>, vector<32x128xbf16>, vector<8x128xf32> -> vector<8x128xf32>
    %154 = vector.broadcast %3 : vector<1x128xf32> to vector<8x128xf32>
    %155 = arith.addf %153, %154 : vector<8x128xf32>
    %156 = arith.truncf %132 : vector<8x32xf32> to vector<8x32xbf16>
    %cst_34 = arith.constant dense<0.000000e+00> : vector<8x128xf32>
    %157 = tpu.matmul %156, %2, %cst_34 {dimension_numbers = #tpu.dot_dimension_numbers<[1], [0], [0], [1], [0, 0, 1, 1], [], []>} : vector<8x32xbf16>, vector<32x128xbf16>, vector<8x128xf32> -> vector<8x128xf32>
    %158 = arith.addf %155, %157 : vector<8x128xf32>
    %159 = arith.negf %158 : vector<8x128xf32>
    %160 = math.exp %159 : vector<8x128xf32>
    %cst_35 = arith.constant 1.000000e+00 : f32
    %161 = vector.broadcast %cst_35 : f32 to vector<8x128xf32>
    %162 = arith.addf %161, %160 : vector<8x128xf32>
    %163 = arith.divf %161, %162 : vector<8x128xf32>
    %164 = math.tanh %158 : vector<8x128xf32>
    %165 = vector.extract_strided_slice %163 {offsets = [0, 0], sizes = [8, 32], strides = [1, 1]} : vector<8x128xf32> to vector<8x32xf32>
    %166 = vector.extract_strided_slice %163 {offsets = [0, 32], sizes = [8, 32], strides = [1, 1]} : vector<8x128xf32> to vector<8x32xf32>
    %167 = vector.extract_strided_slice %163 {offsets = [0, 64], sizes = [8, 32], strides = [1, 1]} : vector<8x128xf32> to vector<8x32xf32>
    %168 = vector.extract_strided_slice %164 {offsets = [0, 96], sizes = [8, 32], strides = [1, 1]} : vector<8x128xf32> to vector<8x32xf32>
    %169 = arith.mulf %166, %130 : vector<8x32xf32>
    %170 = arith.mulf %165, %168 : vector<8x32xf32>
    %171 = arith.addf %169, %170 : vector<8x32xf32>
    %172 = math.tanh %171 : vector<8x32xf32>
    %173 = arith.mulf %167, %172 : vector<8x32xf32>
    %c32_36 = arith.constant 32 : index
    %c0_37 = arith.constant 0 : index
    %174 = vector.load %arg0[%c32_36, %c0_37] : memref<64x128xf32, #tpu.memory_space<vmem>>, vector<8x128xf32>
    %175 = arith.truncf %151 : vector<8x32xf32> to vector<8x32xbf16>
    %cst_38 = arith.constant dense<0.000000e+00> : vector<8x128xf32>
    %176 = tpu.matmul %175, %0, %cst_38 {dimension_numbers = #tpu.dot_dimension_numbers<[1], [0], [0], [1], [0, 0, 1, 1], [], []>} : vector<8x32xbf16>, vector<32x128xbf16>, vector<8x128xf32> -> vector<8x128xf32>
    %177 = arith.addf %174, %176 : vector<8x128xf32>
    %178 = arith.negf %177 : vector<8x128xf32>
    %179 = math.exp %178 : vector<8x128xf32>
    %cst_39 = arith.constant 1.000000e+00 : f32
    %180 = vector.broadcast %cst_39 : f32 to vector<8x128xf32>
    %181 = arith.addf %180, %179 : vector<8x128xf32>
    %182 = arith.divf %180, %181 : vector<8x128xf32>
    %183 = math.tanh %177 : vector<8x128xf32>
    %184 = vector.extract_strided_slice %182 {offsets = [0, 0], sizes = [8, 32], strides = [1, 1]} : vector<8x128xf32> to vector<8x32xf32>
    %185 = vector.extract_strided_slice %182 {offsets = [0, 32], sizes = [8, 32], strides = [1, 1]} : vector<8x128xf32> to vector<8x32xf32>
    %186 = vector.extract_strided_slice %182 {offsets = [0, 64], sizes = [8, 32], strides = [1, 1]} : vector<8x128xf32> to vector<8x32xf32>
    %187 = vector.extract_strided_slice %183 {offsets = [0, 96], sizes = [8, 32], strides = [1, 1]} : vector<8x128xf32> to vector<8x32xf32>
    %188 = arith.mulf %185, %149 : vector<8x32xf32>
    %189 = arith.mulf %184, %187 : vector<8x32xf32>
    %190 = arith.addf %188, %189 : vector<8x32xf32>
    %191 = math.tanh %190 : vector<8x32xf32>
    %192 = arith.mulf %186, %191 : vector<8x32xf32>
    %193 = arith.truncf %192 : vector<8x32xf32> to vector<8x32xbf16>
    %cst_40 = arith.constant dense<0.000000e+00> : vector<8x128xf32>
    %194 = tpu.matmul %193, %1, %cst_40 {dimension_numbers = #tpu.dot_dimension_numbers<[1], [0], [0], [1], [0, 0, 1, 1], [], []>} : vector<8x32xbf16>, vector<32x128xbf16>, vector<8x128xf32> -> vector<8x128xf32>
    %195 = vector.broadcast %3 : vector<1x128xf32> to vector<8x128xf32>
    %196 = arith.addf %194, %195 : vector<8x128xf32>
    %197 = arith.truncf %173 : vector<8x32xf32> to vector<8x32xbf16>
    %cst_41 = arith.constant dense<0.000000e+00> : vector<8x128xf32>
    %198 = tpu.matmul %197, %2, %cst_41 {dimension_numbers = #tpu.dot_dimension_numbers<[1], [0], [0], [1], [0, 0, 1, 1], [], []>} : vector<8x32xbf16>, vector<32x128xbf16>, vector<8x128xf32> -> vector<8x128xf32>
    %199 = arith.addf %196, %198 : vector<8x128xf32>
    %200 = arith.negf %199 : vector<8x128xf32>
    %201 = math.exp %200 : vector<8x128xf32>
    %cst_42 = arith.constant 1.000000e+00 : f32
    %202 = vector.broadcast %cst_42 : f32 to vector<8x128xf32>
    %203 = arith.addf %202, %201 : vector<8x128xf32>
    %204 = arith.divf %202, %203 : vector<8x128xf32>
    %205 = math.tanh %199 : vector<8x128xf32>
    %206 = vector.extract_strided_slice %204 {offsets = [0, 0], sizes = [8, 32], strides = [1, 1]} : vector<8x128xf32> to vector<8x32xf32>
    %207 = vector.extract_strided_slice %204 {offsets = [0, 32], sizes = [8, 32], strides = [1, 1]} : vector<8x128xf32> to vector<8x32xf32>
    %208 = vector.extract_strided_slice %204 {offsets = [0, 64], sizes = [8, 32], strides = [1, 1]} : vector<8x128xf32> to vector<8x32xf32>
    %209 = vector.extract_strided_slice %205 {offsets = [0, 96], sizes = [8, 32], strides = [1, 1]} : vector<8x128xf32> to vector<8x32xf32>
    %210 = arith.mulf %207, %171 : vector<8x32xf32>
    %211 = arith.mulf %206, %209 : vector<8x32xf32>
    %212 = arith.addf %210, %211 : vector<8x32xf32>
    %213 = math.tanh %212 : vector<8x32xf32>
    %214 = arith.mulf %208, %213 : vector<8x32xf32>
    %c40_43 = arith.constant 40 : index
    %c0_44 = arith.constant 0 : index
    %215 = vector.load %arg0[%c40_43, %c0_44] : memref<64x128xf32, #tpu.memory_space<vmem>>, vector<8x128xf32>
    %216 = arith.truncf %192 : vector<8x32xf32> to vector<8x32xbf16>
    %cst_45 = arith.constant dense<0.000000e+00> : vector<8x128xf32>
    %217 = tpu.matmul %216, %0, %cst_45 {dimension_numbers = #tpu.dot_dimension_numbers<[1], [0], [0], [1], [0, 0, 1, 1], [], []>} : vector<8x32xbf16>, vector<32x128xbf16>, vector<8x128xf32> -> vector<8x128xf32>
    %218 = arith.addf %215, %217 : vector<8x128xf32>
    %219 = arith.negf %218 : vector<8x128xf32>
    %220 = math.exp %219 : vector<8x128xf32>
    %cst_46 = arith.constant 1.000000e+00 : f32
    %221 = vector.broadcast %cst_46 : f32 to vector<8x128xf32>
    %222 = arith.addf %221, %220 : vector<8x128xf32>
    %223 = arith.divf %221, %222 : vector<8x128xf32>
    %224 = math.tanh %218 : vector<8x128xf32>
    %225 = vector.extract_strided_slice %223 {offsets = [0, 0], sizes = [8, 32], strides = [1, 1]} : vector<8x128xf32> to vector<8x32xf32>
    %226 = vector.extract_strided_slice %223 {offsets = [0, 32], sizes = [8, 32], strides = [1, 1]} : vector<8x128xf32> to vector<8x32xf32>
    %227 = vector.extract_strided_slice %223 {offsets = [0, 64], sizes = [8, 32], strides = [1, 1]} : vector<8x128xf32> to vector<8x32xf32>
    %228 = vector.extract_strided_slice %224 {offsets = [0, 96], sizes = [8, 32], strides = [1, 1]} : vector<8x128xf32> to vector<8x32xf32>
    %229 = arith.mulf %226, %190 : vector<8x32xf32>
    %230 = arith.mulf %225, %228 : vector<8x32xf32>
    %231 = arith.addf %229, %230 : vector<8x32xf32>
    %232 = math.tanh %231 : vector<8x32xf32>
    %233 = arith.mulf %227, %232 : vector<8x32xf32>
    %234 = arith.truncf %233 : vector<8x32xf32> to vector<8x32xbf16>
    %cst_47 = arith.constant dense<0.000000e+00> : vector<8x128xf32>
    %235 = tpu.matmul %234, %1, %cst_47 {dimension_numbers = #tpu.dot_dimension_numbers<[1], [0], [0], [1], [0, 0, 1, 1], [], []>} : vector<8x32xbf16>, vector<32x128xbf16>, vector<8x128xf32> -> vector<8x128xf32>
    %236 = vector.broadcast %3 : vector<1x128xf32> to vector<8x128xf32>
    %237 = arith.addf %235, %236 : vector<8x128xf32>
    %238 = arith.truncf %214 : vector<8x32xf32> to vector<8x32xbf16>
    %cst_48 = arith.constant dense<0.000000e+00> : vector<8x128xf32>
    %239 = tpu.matmul %238, %2, %cst_48 {dimension_numbers = #tpu.dot_dimension_numbers<[1], [0], [0], [1], [0, 0, 1, 1], [], []>} : vector<8x32xbf16>, vector<32x128xbf16>, vector<8x128xf32> -> vector<8x128xf32>
    %240 = arith.addf %237, %239 : vector<8x128xf32>
    %241 = arith.negf %240 : vector<8x128xf32>
    %242 = math.exp %241 : vector<8x128xf32>
    %cst_49 = arith.constant 1.000000e+00 : f32
    %243 = vector.broadcast %cst_49 : f32 to vector<8x128xf32>
    %244 = arith.addf %243, %242 : vector<8x128xf32>
    %245 = arith.divf %243, %244 : vector<8x128xf32>
    %246 = math.tanh %240 : vector<8x128xf32>
    %247 = vector.extract_strided_slice %245 {offsets = [0, 0], sizes = [8, 32], strides = [1, 1]} : vector<8x128xf32> to vector<8x32xf32>
    %248 = vector.extract_strided_slice %245 {offsets = [0, 32], sizes = [8, 32], strides = [1, 1]} : vector<8x128xf32> to vector<8x32xf32>
    %249 = vector.extract_strided_slice %245 {offsets = [0, 64], sizes = [8, 32], strides = [1, 1]} : vector<8x128xf32> to vector<8x32xf32>
    %250 = vector.extract_strided_slice %246 {offsets = [0, 96], sizes = [8, 32], strides = [1, 1]} : vector<8x128xf32> to vector<8x32xf32>
    %251 = arith.mulf %248, %212 : vector<8x32xf32>
    %252 = arith.mulf %247, %250 : vector<8x32xf32>
    %253 = arith.addf %251, %252 : vector<8x32xf32>
    %254 = math.tanh %253 : vector<8x32xf32>
    %255 = arith.mulf %249, %254 : vector<8x32xf32>
    %c48 = arith.constant 48 : index
    %c0_50 = arith.constant 0 : index
    %256 = vector.load %arg0[%c48, %c0_50] : memref<64x128xf32, #tpu.memory_space<vmem>>, vector<8x128xf32>
    %257 = arith.truncf %233 : vector<8x32xf32> to vector<8x32xbf16>
    %cst_51 = arith.constant dense<0.000000e+00> : vector<8x128xf32>
    %258 = tpu.matmul %257, %0, %cst_51 {dimension_numbers = #tpu.dot_dimension_numbers<[1], [0], [0], [1], [0, 0, 1, 1], [], []>} : vector<8x32xbf16>, vector<32x128xbf16>, vector<8x128xf32> -> vector<8x128xf32>
    %259 = arith.addf %256, %258 : vector<8x128xf32>
    %260 = arith.negf %259 : vector<8x128xf32>
    %261 = math.exp %260 : vector<8x128xf32>
    %cst_52 = arith.constant 1.000000e+00 : f32
    %262 = vector.broadcast %cst_52 : f32 to vector<8x128xf32>
    %263 = arith.addf %262, %261 : vector<8x128xf32>
    %264 = arith.divf %262, %263 : vector<8x128xf32>
    %265 = math.tanh %259 : vector<8x128xf32>
    %266 = vector.extract_strided_slice %264 {offsets = [0, 0], sizes = [8, 32], strides = [1, 1]} : vector<8x128xf32> to vector<8x32xf32>
    %267 = vector.extract_strided_slice %264 {offsets = [0, 32], sizes = [8, 32], strides = [1, 1]} : vector<8x128xf32> to vector<8x32xf32>
    %268 = vector.extract_strided_slice %264 {offsets = [0, 64], sizes = [8, 32], strides = [1, 1]} : vector<8x128xf32> to vector<8x32xf32>
    %269 = vector.extract_strided_slice %265 {offsets = [0, 96], sizes = [8, 32], strides = [1, 1]} : vector<8x128xf32> to vector<8x32xf32>
    %270 = arith.mulf %267, %231 : vector<8x32xf32>
    %271 = arith.mulf %266, %269 : vector<8x32xf32>
    %272 = arith.addf %270, %271 : vector<8x32xf32>
    %273 = math.tanh %272 : vector<8x32xf32>
    %274 = arith.mulf %268, %273 : vector<8x32xf32>
    %275 = arith.truncf %274 : vector<8x32xf32> to vector<8x32xbf16>
    %cst_53 = arith.constant dense<0.000000e+00> : vector<8x128xf32>
    %276 = tpu.matmul %275, %1, %cst_53 {dimension_numbers = #tpu.dot_dimension_numbers<[1], [0], [0], [1], [0, 0, 1, 1], [], []>} : vector<8x32xbf16>, vector<32x128xbf16>, vector<8x128xf32> -> vector<8x128xf32>
    %277 = vector.broadcast %3 : vector<1x128xf32> to vector<8x128xf32>
    %278 = arith.addf %276, %277 : vector<8x128xf32>
    %279 = arith.truncf %255 : vector<8x32xf32> to vector<8x32xbf16>
    %cst_54 = arith.constant dense<0.000000e+00> : vector<8x128xf32>
    %280 = tpu.matmul %279, %2, %cst_54 {dimension_numbers = #tpu.dot_dimension_numbers<[1], [0], [0], [1], [0, 0, 1, 1], [], []>} : vector<8x32xbf16>, vector<32x128xbf16>, vector<8x128xf32> -> vector<8x128xf32>
    %281 = arith.addf %278, %280 : vector<8x128xf32>
    %282 = arith.negf %281 : vector<8x128xf32>
    %283 = math.exp %282 : vector<8x128xf32>
    %cst_55 = arith.constant 1.000000e+00 : f32
    %284 = vector.broadcast %cst_55 : f32 to vector<8x128xf32>
    %285 = arith.addf %284, %283 : vector<8x128xf32>
    %286 = arith.divf %284, %285 : vector<8x128xf32>
    %287 = math.tanh %281 : vector<8x128xf32>
    %288 = vector.extract_strided_slice %286 {offsets = [0, 0], sizes = [8, 32], strides = [1, 1]} : vector<8x128xf32> to vector<8x32xf32>
    %289 = vector.extract_strided_slice %286 {offsets = [0, 32], sizes = [8, 32], strides = [1, 1]} : vector<8x128xf32> to vector<8x32xf32>
    %290 = vector.extract_strided_slice %286 {offsets = [0, 64], sizes = [8, 32], strides = [1, 1]} : vector<8x128xf32> to vector<8x32xf32>
    %291 = vector.extract_strided_slice %287 {offsets = [0, 96], sizes = [8, 32], strides = [1, 1]} : vector<8x128xf32> to vector<8x32xf32>
    %292 = arith.mulf %289, %253 : vector<8x32xf32>
    %293 = arith.mulf %288, %291 : vector<8x32xf32>
    %294 = arith.addf %292, %293 : vector<8x32xf32>
    %295 = math.tanh %294 : vector<8x32xf32>
    %296 = arith.mulf %290, %295 : vector<8x32xf32>
    %c56 = arith.constant 56 : index
    %c0_56 = arith.constant 0 : index
    %297 = vector.load %arg0[%c56, %c0_56] : memref<64x128xf32, #tpu.memory_space<vmem>>, vector<8x128xf32>
    %298 = arith.truncf %274 : vector<8x32xf32> to vector<8x32xbf16>
    %cst_57 = arith.constant dense<0.000000e+00> : vector<8x128xf32>
    %299 = tpu.matmul %298, %0, %cst_57 {dimension_numbers = #tpu.dot_dimension_numbers<[1], [0], [0], [1], [0, 0, 1, 1], [], []>} : vector<8x32xbf16>, vector<32x128xbf16>, vector<8x128xf32> -> vector<8x128xf32>
    %300 = arith.addf %297, %299 : vector<8x128xf32>
    %301 = arith.negf %300 : vector<8x128xf32>
    %302 = math.exp %301 : vector<8x128xf32>
    %cst_58 = arith.constant 1.000000e+00 : f32
    %303 = vector.broadcast %cst_58 : f32 to vector<8x128xf32>
    %304 = arith.addf %303, %302 : vector<8x128xf32>
    %305 = arith.divf %303, %304 : vector<8x128xf32>
    %306 = math.tanh %300 : vector<8x128xf32>
    %307 = vector.extract_strided_slice %305 {offsets = [0, 0], sizes = [8, 32], strides = [1, 1]} : vector<8x128xf32> to vector<8x32xf32>
    %308 = vector.extract_strided_slice %305 {offsets = [0, 32], sizes = [8, 32], strides = [1, 1]} : vector<8x128xf32> to vector<8x32xf32>
    %309 = vector.extract_strided_slice %305 {offsets = [0, 64], sizes = [8, 32], strides = [1, 1]} : vector<8x128xf32> to vector<8x32xf32>
    %310 = vector.extract_strided_slice %306 {offsets = [0, 96], sizes = [8, 32], strides = [1, 1]} : vector<8x128xf32> to vector<8x32xf32>
    %311 = arith.mulf %308, %272 : vector<8x32xf32>
    %312 = arith.mulf %307, %310 : vector<8x32xf32>
    %313 = arith.addf %311, %312 : vector<8x32xf32>
    %314 = math.tanh %313 : vector<8x32xf32>
    %315 = arith.mulf %309, %314 : vector<8x32xf32>
    %316 = arith.truncf %315 : vector<8x32xf32> to vector<8x32xbf16>
    %cst_59 = arith.constant dense<0.000000e+00> : vector<8x128xf32>
    %317 = tpu.matmul %316, %1, %cst_59 {dimension_numbers = #tpu.dot_dimension_numbers<[1], [0], [0], [1], [0, 0, 1, 1], [], []>} : vector<8x32xbf16>, vector<32x128xbf16>, vector<8x128xf32> -> vector<8x128xf32>
    %318 = vector.broadcast %3 : vector<1x128xf32> to vector<8x128xf32>
    %319 = arith.addf %317, %318 : vector<8x128xf32>
    %320 = arith.truncf %296 : vector<8x32xf32> to vector<8x32xbf16>
    %cst_60 = arith.constant dense<0.000000e+00> : vector<8x128xf32>
    %321 = tpu.matmul %320, %2, %cst_60 {dimension_numbers = #tpu.dot_dimension_numbers<[1], [0], [0], [1], [0, 0, 1, 1], [], []>} : vector<8x32xbf16>, vector<32x128xbf16>, vector<8x128xf32> -> vector<8x128xf32>
    %322 = arith.addf %319, %321 : vector<8x128xf32>
    %323 = arith.negf %322 : vector<8x128xf32>
    %324 = math.exp %323 : vector<8x128xf32>
    %cst_61 = arith.constant 1.000000e+00 : f32
    %325 = vector.broadcast %cst_61 : f32 to vector<8x128xf32>
    %326 = arith.addf %325, %324 : vector<8x128xf32>
    %327 = arith.divf %325, %326 : vector<8x128xf32>
    %328 = math.tanh %322 : vector<8x128xf32>
    %329 = vector.extract_strided_slice %327 {offsets = [0, 0], sizes = [8, 32], strides = [1, 1]} : vector<8x128xf32> to vector<8x32xf32>
    %330 = vector.extract_strided_slice %327 {offsets = [0, 32], sizes = [8, 32], strides = [1, 1]} : vector<8x128xf32> to vector<8x32xf32>
    %331 = vector.extract_strided_slice %327 {offsets = [0, 64], sizes = [8, 32], strides = [1, 1]} : vector<8x128xf32> to vector<8x32xf32>
    %332 = vector.extract_strided_slice %328 {offsets = [0, 96], sizes = [8, 32], strides = [1, 1]} : vector<8x128xf32> to vector<8x32xf32>
    %333 = arith.mulf %330, %294 : vector<8x32xf32>
    %334 = arith.mulf %329, %332 : vector<8x32xf32>
    %335 = arith.addf %333, %334 : vector<8x32xf32>
    %336 = math.tanh %335 : vector<8x32xf32>
    %337 = arith.mulf %331, %336 : vector<8x32xf32>
    %cst_62 = arith.constant dense<0.000000e+00> : vector<8x128xf32>
    %338 = tpu.matmul %337, %4, %cst_62 {dimension_numbers = #tpu.dot_dimension_numbers<[1], [0], [0], [1], [0, 0, 1, 1], [], []>} : vector<8x32xf32>, vector<32x128xf32>, vector<8x128xf32> -> vector<8x128xf32>
    %339 = vector.broadcast %5 : vector<1x128xf32> to vector<8x128xf32>
    %340 = arith.addf %338, %339 : vector<8x128xf32>
    %c0_63 = arith.constant 0 : index
    %c0_64 = arith.constant 0 : index
    %341 = vector.load %arg3[%c0_63, %c0_64] : memref<8x128xf32, #tpu.memory_space<vmem>>, vector<8x128xf32>
    tpu.vector_store %arg3[%c0_63, %c0_64], %340 {strides = array<i32>} : memref<8x128xf32, #tpu.memory_space<vmem>>, vector<8x128xf32>,
    return
  }
}

</mosaic_0001>

<bundles_post_ra>
// kernel: tpu_custom_call.1
= control target key start
LH: loop header
LB: loop body
LE: loop exit
PB: predicated region body
PF: predicated region fallthrough
CT: control target
= control target key end

     0   :  { %8 = vsyncpa [#allocation3], 0  ;;  %s2692_s0 = inlined_call_operand.hbm [shape: f32[64,128], index: 0, kind: input, shape index: {}]   ;;  %s2693_s1 = inlined_call_operand.hbm [shape: bf16[96,128], index: 1, kind: input, shape index: {}]   ;;  %s2694_s2 = inlined_call_operand.hbm [shape: f32[48,128], index: 2, kind: input, shape index: {}]   ;;  %s2695_s3 = inlined_call_operand.hbm [shape: f32[8,128], index: 3, kind: output, shape index: {}]  }
   0x1   :  { %9 = vsyncpa [#allocation6], 0 }
   0x2   :  { %10 = vsyncpa [#allocation4], 0  ;;  %s2304_s12 = smov [#allocation5]   ;;  %s2210_s16 = scalar_lea.hbm %s2693_s1, 768 }
   0x3   :  { %s28_s13 = sshll.u32 %s2304_s12, 4  ;;  %p2211_p0 = scmp.ne.s32.totalorder %s2693_s1, %s2210_s16  ;;  %s29_s13 = int_to_ptr.vmem [resolvable:$true] %s28_s13 }
   0x4   :  { %p2214_p1 = scmp.lt.u32.totalorder %s2210_s16, %s2693_s1 }
   0x6   :  { %p2216_p2 = pnand %p2214_p1, %p2211_p0 }
   0x8   :  { %2219 = shalt.err (!%p2216_p2)
}
   0x9   :  { %s2220_s21 = scalar_lea.vmem %s29_s13, 768  ;;  %p2225_p4 = scmp.lt.s32.totalorder %s29_s13, %s29_s13 }
   0xa   :  { %p2221_p3 = scmp.ne.s32.totalorder %s29_s13, %s2220_s21  ;;  %p2226_p5 = scmp.lt.s32.totalorder %s2220_s21, %s2220_s21 }
   0xc   :  { %p2227_p6 = por %p2226_p5, %p2225_p4 }
   0xe   :  { %p2228_p7 = pnand %p2227_p6, %p2221_p3 }
  0x10   :  { %2231 = shalt.err (!%p2228_p7)
}
  0x11   :  { %s2305_s22 = smov 64   ;;  %s2306_s23 = smov 4  }
  0x12   :  { %34 = dma.hbm_to_vmem [thread:$0]  %s2693_s1, 768, %s29_s13, [#allocation6], %s2305_s22, %s2305_s22, %s2306_s23  }
  0x13   :  { %s2307_s26 = smov [#allocation2]   ;;  %s2232_s30 = scalar_lea.hbm %s2692_s0, 1024 }
  0x14   :  { %s16_s27 = sshll.u32 %s2307_s26, 4  ;;  %p2233_p8 = scmp.ne.s32.totalorder %s2692_s0, %s2232_s30  ;;  %s17_s27 = int_to_ptr.vmem [resolvable:$true] %s16_s27 }
  0x15   :  { %p2236_p9 = scmp.lt.u32.totalorder %s2232_s30, %s2692_s0 }
  0x17   :  { %p2238_p10 = pnand %p2236_p9, %p2233_p8 }
  0x19   :  { %2241 = shalt.err (!%p2238_p10)
}
  0x1a   :  { %s2242_s8 = scalar_lea.vmem %s17_s27, 1024  ;;  %p2247_p12 = scmp.lt.s32.totalorder %s17_s27, %s17_s27 }
  0x1b   :  { %p2243_p11 = scmp.ne.s32.totalorder %s17_s27, %s2242_s8  ;;  %p2248_p13 = scmp.lt.s32.totalorder %s2242_s8, %s2242_s8 }
  0x1d   :  { %p2249_p0 = por %p2248_p13, %p2247_p12 }
  0x1f   :  { %p2250_p1 = pnand %p2249_p0, %p2243_p11 }
  0x21   :  { %2253 = shalt.err (!%p2250_p1)
}
  0x22   :  { %s2308_s1 = smov 128   ;;  %s2309_s9 = smov 8  }
  0x23   :  { %22 = dma.hbm_to_vmem [thread:$0]  %s2692_s0, 1024, %s17_s27, [#allocation3], %s2308_s1, %s2308_s1, %s2309_s9  }
  0x24   :  { %s2310_s12 = smov [#allocation7]   ;;  %s2254_s16 = scalar_lea.hbm %s2694_s2, 768 }
  0x25   :  { %s40_s13 = sshll.u32 %s2310_s12, 4  ;;  %p2255_p2 = scmp.ne.s32.totalorder %s2694_s2, %s2254_s16  ;;  %s41_s13 = int_to_ptr.vmem [resolvable:$true] %s40_s13 }
  0x26   :  { %p2258_p3 = scmp.lt.u32.totalorder %s2254_s16, %s2694_s2 }
  0x28   :  { %p2260_p4 = pnand %p2258_p3, %p2255_p2 }
  0x2a   :  { %2263 = shalt.err (!%p2260_p4)
}
  0x2b   :  { %s2264_s21 = scalar_lea.vmem %s41_s13, 768  ;;  %p2269_p6 = scmp.lt.s32.totalorder %s41_s13, %s41_s13 }
  0x2c   :  { %p2265_p5 = scmp.ne.s32.totalorder %s41_s13, %s2264_s21  ;;  %p2270_p7 = scmp.lt.s32.totalorder %s2264_s21, %s2264_s21 }
  0x2e   :  { %p2271_p8 = por %p2270_p7, %p2269_p6 }
  0x30   :  { %p2272_p9 = pnand %p2271_p8, %p2265_p5 }
  0x32   :  { %2275 = shalt.err (!%p2272_p9)
}
  0x33   :  { %46 = dma.hbm_to_vmem [thread:$0]  %s2694_s2, 768, %s41_s13, [#allocation6], %s2308_s1, %s2308_s1, %s2309_s9  }
  0x34   :  { %2298 = dma.done.wait [#allocation3], 1024  }
  0x35   :  { %2299 = vsyncadd [#allocation3], 4294966272 }
  0x36   :  { %2300 = dma.done.wait [#allocation6], 1536  }
  0x37   :  { %2301 = vsyncadd [#allocation6], 4294965760  ;;  %v2311_v0 = vmov 0.0   ;;  %vm2312_vm0 = vmmov 0   ;;  %v2381_v1 = vld [vmem:[#allocation5] sm:$0xff]   ;;  %v2384_v2 = vld [vmem:[#allocation5 + $0x8] sm:$0xff]  }
  0x38   :  { %1812 = vmatprep.subr.bf16.mxu1 %v2311_v0  ;;  %1816 = vmatprep.mubr.msk.bf16.mxu1 %vm2312_vm0, %v2311_v0  ;;  %v2313_v3 = vmov 0   ;;  %v75_v4 = vld [vmem:[#allocation2] sm:$0xff]  ;;  %s2314_s2 = smov 32   ;;  %v2400_v20 = vld [vmem:[#allocation5 + $0x10] sm:$0xff]   ;;  %v2403_v21 = vld [vmem:[#allocation5 + $0x18] sm:$0xff]   ;;  %vm88_vm1 = vcmask 261120  }
  0x39   :  { %1836 = vmatprep.subr.bf16.mxu0 %v2311_v0  ;;  %1840 = vmatprep.mubr.msk.bf16.mxu0 %vm2312_vm0, %v2311_v0  ;;  %v2410_v26 = vld [vmem:[#allocation5 + $0x20] sm:$0xff]   ;;  %v2415_v28 = vld [vmem:[#allocation5 + $0x28] sm:$0xff]   ;;  %v2434_v35 = vld [vmem:[#allocation7] ss:$0 sm:$0xff]  ;;  %s2316_s24 = smov [#allocation8]  }
  0x3a   :  { %1813 = vmatpush3.bf16.msra.mxu1 %v2381_v1  ;;  %1837 = vmatpush3.bf16.msra.mxu0 %v2381_v1  ;;  %v297_v29 = vld [vmem:[#allocation2 + $0x8] sm:$0xff]  ;;  %s1678_s25 = sshll.u32 %s2316_s24, 4  ;;  %s1679_s25 = int_to_ptr.vmem [resolvable:$true] %s1678_s25 }
  0x3b   :  { %1814 = vmatprep.subr.bf16.mxu1 %v2311_v0  ;;  %1838 = vmatprep.subr.bf16.mxu0 %v2311_v0  ;;  %s2276_s26 = scalar_lea.vmem %s1679_s25, 128  ;;  %p2281_p11 = scmp.lt.s32.totalorder %s1679_s25, %s1679_s25 }
  0x3c   :  { %p2277_p10 = scmp.ne.s32.totalorder %s1679_s25, %s2276_s26  ;;  %p2282_p12 = scmp.lt.s32.totalorder %s2276_s26, %s2276_s26 }
  0x3e   :  { %1815 = vmatpush3.bf16.msra.mxu1 %v2384_v2  ;;  %1839 = vmatpush3.bf16.msra.mxu0 %v2384_v2  ;;  %p2283_p13 = por %p2282_p12, %p2281_p11 }
  0x3f   :  { %1820 = vmatprep.subr.bf16.mxu1 %v2311_v0  ;;  %1844 = vmatprep.subr.bf16.mxu0 %v2311_v0 }
  0x40   :  { %p2284_p0 = pnand %p2283_p13, %p2277_p10 }
  0x41   :  { %1817 = vmatmul.mubr.bf16.vlgmr.msra.gmra.mrb[0].mxu1 %v2313_v3 }
  0x42   :  { %1824 = vmatprep.mubr.msk.bf16.mxu1 %vm2312_vm0, %v2311_v0  ;;  %1821 = vmatpush3.bf16.msra.mxu1 %v2400_v20 }
  0x43   :  { %1822 = vmatprep.subr.bf16.mxu1 %v2311_v0 }
  0x46   :  { %1823 = vmatpush3.bf16.msra.mxu1 %v2403_v21 }
  0x47   :  { %1828 = vmatprep.subr.bf16.mxu1 %v2311_v0 }
 0x114   :  { %v126_v5 = vpop.f32.mrb[0].mxu1 }
 0x115   :  { %v132_v6 = vadd.f32 %v126_v5, %v75_v4  ;;  %v1818_v7 = vpop.f32.mrb[1].mxu1 }
 0x116   :  { %v129_v8 = vpop.f32.mrb[2].mxu1 }
 0x117   :  { %2080 = vtanh.f32 %v132_v6  ;;  %v1819_v9 = vpop.f32.mrb[3].mxu1  ;;  %v1690_v11 = vmul.f32 -1.442695, %v132_v6 }
 0x119   :  { %2082 = vpow2.f32 %v1690_v11 }
 0x121   :  { %v2081_v10 = vpop.eup %2080 }
 0x122   :  { %142 = vrot.lane.b32.xlu0 %v2081_v10, %s2314_s2  ;;  %v482_v10 = vld [vmem:[#allocation2 + $0x10] sm:$0xff] }
 0x123   :  { %v2083_v12 = vpop.eup %2082 }
 0x124   :  { %v136_v13 = vadd.f32 1.0, %v2083_v12 }
 0x126   :  { %2084 = vrcp.f32 %v136_v13 }
 0x130   :  { %v2085_v14 = vpop.eup %2084 }
 0x131   :  { %v140_v17 = vmul.f32 0.0, %v2085_v14 }
 0x194   :  { %v143_v15 = vpop.permute.xlu0 %142 }
 0x195   :  { %v145_v16 = vmul.f32 %v2085_v14, %v143_v15 }
 0x197   :  { %147 = vrot.lane.b32.xlu0 %v145_v16, %s2314_s2 }
 0x209   :  { %v148_v18 = vpop.permute.xlu0 %147 }
 0x20a   :  { %v2397_v19 = vadd.f32 %v148_v18, %v140_v17 }
 0x20c   :  { %2086 = vtanh.f32 %v2397_v19 }
 0x216   :  { %v2087_v22 = vpop.eup %2086 }
 0x217   :  { %153 = vrot.lane.b32.xlu1 %v2087_v22, %s2314_s2 }
 0x289   :  { %v154_v23 = vpop.permute.xlu1 %153 }
 0x28a   :  { %v156_v24 = vmul.f32 %v2085_v14, %v154_v23 }
 0x28c   :  { %v157_v25 = vpack.c.bf16 %v156_v24, %v156_v24 }
 0x28e   :  { %163 = vrot.lane.b32.xlu1 %v157_v25, %s2305_s22 }
 0x300   :  { %v164_v27 = vpop.permute.xlu1 %163 }
 0x301   :  { %1825 = vmatmul.mubr.msk.bf16.vlgmr.msra.gmra.mrb[4].mxu1 %vm88_vm1, %v164_v27  ;;  %1841 = vmatmul.mubr.msk.bf16.vlgmr.msra.gmra.mrb[0].mxu0 %vm88_vm1, %v164_v27 }
 0x302   :  { %1829 = vmatpush3.bf16.msra.mxu1 %v2410_v26  ;;  %1832 = vmatprep.mubr.msk.bf16.mxu1 %vm2312_vm0, %v2311_v0 }
 0x303   :  { %1830 = vmatprep.subr.bf16.mxu1 %v2311_v0  ;;  %1845 = vmatpush3.bf16.msra.mxu0 %v2400_v20 }
 0x304   :  { %1846 = vmatprep.subr.bf16.mxu0 %v2311_v0  ;;  %1848 = vmatprep.mubr.msk.bf16.mxu0 %vm2312_vm0, %v2311_v0 }
 0x306   :  { %1831 = vmatpush3.bf16.msra.mxu1 %v2415_v28 }
 0x307   :  { %1860 = vmatprep.subr.bf16.mxu1 %v2311_v0  ;;  %1847 = vmatpush3.bf16.msra.mxu0 %v2403_v21 }
 0x308   :  { %1852 = vmatprep.subr.bf16.mxu0 %v2311_v0 }
 0x30d   :  { %1833 = vmatmul.mubr.bf16.vlgmr.msra.gmra.mrb[4].mxu1 %v2313_v3 }
 0x30e   :  { %1861 = vmatpush3.bf16.msra.mxu1 %v2381_v1  ;;  %1864 = vmatprep.mubr.msk.bf16.mxu1 %vm2312_vm0, %v2311_v0 }
 0x30f   :  { %1862 = vmatprep.subr.bf16.mxu1 %v2311_v0 }
 0x312   :  { %1863 = vmatpush3.bf16.msra.mxu1 %v2384_v2 }
 0x313   :  { %1868 = vmatprep.subr.bf16.mxu1 %v2311_v0 }
 0x3d4   :  { %v332_v30 = vpop.f32.mrb[0].mxu0 }
 0x3d5   :  { %v338_v31 = vadd.f32 %v332_v30, %v297_v29  ;;  %v1842_v32 = vpop.f32.mrb[1].mxu0 }
 0x3d6   :  { %v335_v33 = vpop.f32.mrb[2].mxu0 }
 0x3d7   :  { %2088 = vtanh.f32 %v338_v31  ;;  %v1843_v34 = vpop.f32.mrb[3].mxu0  ;;  %v1699_v43 = vmul.f32 -1.442695, %v338_v31 }
 0x3e0   :  { %v266_v36 = vpop.f32.mrb[4].mxu1 }
 0x3e1   :  { %v2089_v37 = vpop.eup %2088  ;;  %v2021_v38 = vadd.f32 %v2434_v35, %v266_v36  ;;  %v1834_v39 = vpop.f32.mrb[5].mxu1 }
 0x3e2   :  { %348 = vrot.lane.b32.xlu0 %v2089_v37, %s2314_s2  ;;  %v269_v40 = vpop.f32.mrb[6].mxu1 }
 0x3e3   :  { %2090 = vtanh.f32 %v2021_v38  ;;  %v1835_v41 = vpop.f32.mrb[7].mxu1  ;;  %v1697_v44 = vmul.f32 -1.442695, %v2021_v38 }
 0x3e4   :  { %2092 = vpow2.f32 %v1699_v43 }
 0x3e5   :  { %2094 = vpow2.f32 %v1697_v44 }
 0x3ed   :  { %v2091_v42 = vpop.eup %2090 }
 0x3ee   :  { %282 = vrot.lane.b32.xlu1 %v2091_v42, %s2314_s2  ;;  %v2093_v45 = vpop.eup %2092 }
 0x3ef   :  { %v342_v46 = vadd.f32 1.0, %v2093_v45  ;;  %v2095_v47 = vpop.eup %2094 }
 0x3f0   :  { %v276_v48 = vadd.f32 1.0, %v2095_v47 }
 0x3f1   :  { %2096 = vrcp.f32 %v342_v46 }
 0x3f2   :  { %2098 = vrcp.f32 %v276_v48 }
 0x3fb   :  { %v2097_v49 = vpop.eup %2096 }
 0x3fc   :  { %v2099_v52 = vpop.eup %2098  ;;  %v346_v55 = vmul.f32 %v2097_v49, %v2397_v19 }
 0x3fd   :  { %v280_v58 = vmul.f32 0.0, %v2099_v52 }
 0x454   :  { %v349_v50 = vpop.permute.xlu0 %348 }
 0x455   :  { %v351_v51 = vmul.f32 %v2097_v49, %v349_v50 }
 0x457   :  { %353 = vrot.lane.b32.xlu0 %v351_v51, %s2314_s2 }
 0x460   :  { %v283_v53 = vpop.permute.xlu1 %282 }
 0x461   :  { %v285_v54 = vmul.f32 %v2099_v52, %v283_v53 }
 0x463   :  { %287 = vrot.lane.b32.xlu1 %v285_v54, %s2314_s2 }
 0x4c9   :  { %v354_v56 = vpop.permute.xlu0 %353 }
 0x4ca   :  { %v2442_v57 = vadd.f32 %v354_v56, %v346_v55  ;;  %v667_v56 = vld [vmem:[#allocation2 + $0x18] sm:$0xff] }
 0x4cc   :  { %2100 = vtanh.f32 %v2442_v57 }
 0x4d5   :  { %v288_v59 = vpop.permute.xlu1 %287 }
 0x4d6   :  { %v2101_v60 = vpop.eup %2100  ;;  %v2445_v61 = vadd.f32 %v288_v59, %v280_v58 }
 0x4d7   :  { %359 = vrot.lane.b32.xlu0 %v2101_v60, %s2314_s2 }
 0x4d8   :  { %2102 = vtanh.f32 %v2445_v61 }
 0x4e2   :  { %v2103_v62 = vpop.eup %2102 }
 0x4e3   :  { %293 = vrot.lane.b32.xlu1 %v2103_v62, %s2314_s2 }
 0x549   :  { %v360_v63 = vpop.permute.xlu0 %359 }
 0x54a   :  { %v362_v3 = vmul.f32 %v2097_v49, %v360_v63 }
 0x54c   :  { %v363_v4 = vpack.c.bf16 %v362_v3, %v362_v3 }
 0x54e   :  { %365 = vrot.lane.b32.xlu0 %v363_v4, %s2305_s22 }
 0x555   :  { %v294_v5 = vpop.permute.xlu1 %293 }
 0x556   :  { %v296_v6 = vmul.f32 %v2099_v52, %v294_v5 }
 0x558   :  { %v410_v7 = vpack.c.bf16 %v296_v6, %v296_v6 }
 0x55a   :  { %412 = vrot.lane.b32.xlu1 %v410_v7, %s2305_s22 }
 0x5c0   :  { %v366_v8 = vpop.permute.xlu0 %365 }
 0x5c1   :  { %1849 = vmatmul.mubr.msk.bf16.vlgmr.msra.gmra.mrb[4].mxu0 %vm88_vm1, %v366_v8  ;;  %1865 = vmatmul.mubr.msk.bf16.vlgmr.msra.gmra.mrb[8].mxu1 %vm88_vm1, %v366_v8 }
 0x5c2   :  { %1853 = vmatpush3.bf16.msra.mxu0 %v2410_v26  ;;  %1856 = vmatprep.mubr.msk.bf16.mxu0 %vm2312_vm0, %v2311_v0 }
 0x5c3   :  { %1854 = vmatprep.subr.bf16.mxu0 %v2311_v0  ;;  %1869 = vmatpush3.bf16.msra.mxu1 %v2400_v20 }
 0x5c4   :  { %1870 = vmatprep.subr.bf16.mxu1 %v2311_v0  ;;  %1872 = vmatprep.mubr.msk.bf16.mxu1 %vm2312_vm0, %v2311_v0 }
 0x5c6   :  { %1855 = vmatpush3.bf16.msra.mxu0 %v2415_v28 }
 0x5c7   :  { %1884 = vmatprep.subr.bf16.mxu0 %v2311_v0  ;;  %1871 = vmatpush3.bf16.msra.mxu1 %v2403_v21 }
 0x5c8   :  { %1876 = vmatprep.subr.bf16.mxu1 %v2311_v0 }
 0x5cc   :  { %v413_v9 = vpop.permute.xlu1 %412 }
 0x5cd   :  { %1857 = vmatmul.mubr.msk.bf16.vlgmr.msra.gmra.mrb[4].mxu0 %vm88_vm1, %v413_v9 }
 0x5ce   :  { %1885 = vmatpush3.bf16.msra.mxu0 %v2381_v1  ;;  %1888 = vmatprep.mubr.msk.bf16.mxu0 %vm2312_vm0, %v2311_v0 }
 0x5cf   :  { %1886 = vmatprep.subr.bf16.mxu0 %v2311_v0 }
 0x5d2   :  { %1887 = vmatpush3.bf16.msra.mxu0 %v2384_v2 }
 0x5d3   :  { %1892 = vmatprep.subr.bf16.mxu0 %v2311_v0 }
 0x694   :  { %v517_v11 = vpop.f32.mrb[8].mxu1 }
 0x695   :  { %v523_v12 = vadd.f32 %v517_v11, %v482_v10  ;;  %v1866_v13 = vpop.f32.mrb[9].mxu1 }
 0x696   :  { %v520_v14 = vpop.f32.mrb[10].mxu1 }
 0x697   :  { %2104 = vtanh.f32 %v523_v12  ;;  %v1867_v15 = vpop.f32.mrb[11].mxu1  ;;  %v1704_v25 = vmul.f32 -1.442695, %v523_v12 }
 0x6a0   :  { %v451_v16 = vpop.f32.mrb[4].mxu0 }
 0x6a1   :  { %v2105_v17 = vpop.eup %2104  ;;  %v2022_v18 = vadd.f32 %v2434_v35, %v451_v16  ;;  %v1858_v19 = vpop.f32.mrb[5].mxu0 }
 0x6a2   :  { %v454_v22 = vpop.f32.mrb[6].mxu0  ;;  %533 = vrot.lane.b32.xlu0 %v2105_v17, %s2314_s2 }
 0x6a3   :  { %2106 = vtanh.f32 %v2022_v18  ;;  %v1859_v23 = vpop.f32.mrb[7].mxu0  ;;  %v1702_v27 = vmul.f32 -1.442695, %v2022_v18 }
 0x6a4   :  { %2108 = vpow2.f32 %v1704_v25 }
 0x6a5   :  { %2110 = vpow2.f32 %v1702_v27 }
 0x6ad   :  { %v2107_v24 = vpop.eup %2106 }
 0x6ae   :  { %467 = vrot.lane.b32.xlu1 %v2107_v24, %s2314_s2  ;;  %v2109_v29 = vpop.eup %2108 }
 0x6af   :  { %v527_v30 = vadd.f32 1.0, %v2109_v29  ;;  %v2111_v31 = vpop.eup %2110 }
 0x6b0   :  { %v461_v32 = vadd.f32 1.0, %v2111_v31 }
 0x6b1   :  { %2112 = vrcp.f32 %v527_v30 }
 0x6b2   :  { %2114 = vrcp.f32 %v461_v32 }
 0x6bb   :  { %v2113_v33 = vpop.eup %2112 }
 0x6bc   :  { %v2115_v37 = vpop.eup %2114  ;;  %v531_v40 = vmul.f32 %v2113_v33, %v2442_v57 }
 0x6bd   :  { %v465_v43 = vmul.f32 %v2115_v37, %v2445_v61 }
 0x714   :  { %v534_v34 = vpop.permute.xlu0 %533 }
 0x715   :  { %v536_v36 = vmul.f32 %v2113_v33, %v534_v34 }
 0x717   :  { %538 = vrot.lane.b32.xlu0 %v536_v36, %s2314_s2 }
 0x720   :  { %v468_v38 = vpop.permute.xlu1 %467 }
 0x721   :  { %v470_v39 = vmul.f32 %v2115_v37, %v468_v38 }
 0x723   :  { %472 = vrot.lane.b32.xlu1 %v470_v39, %s2314_s2 }
 0x789   :  { %v539_v41 = vpop.permute.xlu0 %538 }
 0x78a   :  { %v2479_v42 = vadd.f32 %v539_v41, %v531_v40  ;;  %v852_v41 = vld [vmem:[#allocation2 + $0x20] sm:$0xff] }
 0x78c   :  { %2116 = vtanh.f32 %v2479_v42 }
 0x795   :  { %v473_v44 = vpop.permute.xlu1 %472 }
 0x796   :  { %v2117_v45 = vpop.eup %2116  ;;  %v2483_v46 = vadd.f32 %v473_v44, %v465_v43 }
 0x797   :  { %544 = vrot.lane.b32.xlu0 %v2117_v45, %s2314_s2 }
 0x798   :  { %2118 = vtanh.f32 %v2483_v46 }
 0x7a2   :  { %v2119_v47 = vpop.eup %2118 }
 0x7a3   :  { %478 = vrot.lane.b32.xlu1 %v2119_v47, %s2314_s2 }
 0x809   :  { %v545_v48 = vpop.permute.xlu0 %544 }
 0x80a   :  { %v547_v49 = vmul.f32 %v2113_v33, %v545_v48 }
 0x80c   :  { %v548_v50 = vpack.c.bf16 %v547_v49, %v547_v49 }
 0x80e   :  { %550 = vrot.lane.b32.xlu0 %v548_v50, %s2305_s22 }
 0x815   :  { %v479_v51 = vpop.permute.xlu1 %478 }
 0x816   :  { %v481_v52 = vmul.f32 %v2115_v37, %v479_v51 }
 0x818   :  { %v595_v53 = vpack.c.bf16 %v481_v52, %v481_v52 }
 0x81a   :  { %597 = vrot.lane.b32.xlu1 %v595_v53, %s2305_s22 }
 0x880   :  { %v551_v54 = vpop.permute.xlu0 %550 }
 0x881   :  { %1873 = vmatmul.mubr.msk.bf16.vlgmr.msra.gmra.mrb[12].mxu1 %vm88_vm1, %v551_v54  ;;  %1889 = vmatmul.mubr.msk.bf16.vlgmr.msra.gmra.mrb[8].mxu0 %vm88_vm1, %v551_v54 }
 0x882   :  { %1877 = vmatpush3.bf16.msra.mxu1 %v2410_v26  ;;  %1880 = vmatprep.mubr.msk.bf16.mxu1 %vm2312_vm0, %v2311_v0 }
 0x883   :  { %1878 = vmatprep.subr.bf16.mxu1 %v2311_v0  ;;  %1893 = vmatpush3.bf16.msra.mxu0 %v2400_v20 }
 0x884   :  { %1894 = vmatprep.subr.bf16.mxu0 %v2311_v0  ;;  %1896 = vmatprep.mubr.msk.bf16.mxu0 %vm2312_vm0, %v2311_v0 }
 0x886   :  { %1879 = vmatpush3.bf16.msra.mxu1 %v2415_v28 }
 0x887   :  { %1908 = vmatprep.subr.bf16.mxu1 %v2311_v0  ;;  %1895 = vmatpush3.bf16.msra.mxu0 %v2403_v21 }
 0x888   :  { %1900 = vmatprep.subr.bf16.mxu0 %v2311_v0 }
 0x88c   :  { %v598_v55 = vpop.permute.xlu1 %597 }
 0x88d   :  { %1881 = vmatmul.mubr.msk.bf16.vlgmr.msra.gmra.mrb[12].mxu1 %vm88_vm1, %v598_v55 }
 0x88e   :  { %1909 = vmatpush3.bf16.msra.mxu1 %v2381_v1  ;;  %1912 = vmatprep.mubr.msk.bf16.mxu1 %vm2312_vm0, %v2311_v0 }
 0x88f   :  { %1910 = vmatprep.subr.bf16.mxu1 %v2311_v0 }
 0x892   :  { %1911 = vmatpush3.bf16.msra.mxu1 %v2384_v2 }
 0x893   :  { %1916 = vmatprep.subr.bf16.mxu1 %v2311_v0 }
 0x954   :  { %v702_v57 = vpop.f32.mrb[8].mxu0 }
 0x955   :  { %v708_v58 = vadd.f32 %v702_v57, %v667_v56  ;;  %v1890_v59 = vpop.f32.mrb[9].mxu0 }
 0x956   :  { %v705_v60 = vpop.f32.mrb[10].mxu0 }
 0x957   :  { %2120 = vtanh.f32 %v708_v58  ;;  %v1891_v61 = vpop.f32.mrb[11].mxu0  ;;  %v1709_v8 = vmul.f32 -1.442695, %v708_v58 }
 0x960   :  { %v636_v62 = vpop.f32.mrb[12].mxu1 }
 0x961   :  { %v2121_v63 = vpop.eup %2120  ;;  %v2023_v3 = vadd.f32 %v2434_v35, %v636_v62  ;;  %v1882_v4 = vpop.f32.mrb[13].mxu1 }
 0x962   :  { %718 = vrot.lane.b32.xlu0 %v2121_v63, %s2314_s2  ;;  %v639_v5 = vpop.f32.mrb[14].mxu1 }
 0x963   :  { %2122 = vtanh.f32 %v2023_v3  ;;  %v1883_v6 = vpop.f32.mrb[15].mxu1  ;;  %v1707_v9 = vmul.f32 -1.442695, %v2023_v3 }
 0x964   :  { %2124 = vpow2.f32 %v1709_v8 }
 0x965   :  { %2126 = vpow2.f32 %v1707_v9 }
 0x96d   :  { %v2123_v7 = vpop.eup %2122 }
 0x96e   :  { %652 = vrot.lane.b32.xlu1 %v2123_v7, %s2314_s2  ;;  %v2125_v10 = vpop.eup %2124 }
 0x96f   :  { %v712_v11 = vadd.f32 1.0, %v2125_v10  ;;  %v2127_v12 = vpop.eup %2126 }
 0x970   :  { %v646_v13 = vadd.f32 1.0, %v2127_v12 }
 0x971   :  { %2128 = vrcp.f32 %v712_v11 }
 0x972   :  { %2130 = vrcp.f32 %v646_v13 }
 0x97b   :  { %v2129_v14 = vpop.eup %2128 }
 0x97c   :  { %v2131_v17 = vpop.eup %2130  ;;  %v716_v22 = vmul.f32 %v2129_v14, %v2479_v42 }
 0x97d   :  { %v650_v25 = vmul.f32 %v2131_v17, %v2483_v46 }
 0x9d4   :  { %v719_v15 = vpop.permute.xlu0 %718 }
 0x9d5   :  { %v721_v16 = vmul.f32 %v2129_v14, %v719_v15 }
 0x9d7   :  { %723 = vrot.lane.b32.xlu0 %v721_v16, %s2314_s2 }
 0x9e0   :  { %v653_v18 = vpop.permute.xlu1 %652 }
 0x9e1   :  { %v655_v19 = vmul.f32 %v2131_v17, %v653_v18 }
 0x9e3   :  { %657 = vrot.lane.b32.xlu1 %v655_v19, %s2314_s2 }
 0xa49   :  { %v724_v23 = vpop.permute.xlu0 %723 }
 0xa4a   :  { %v2517_v24 = vadd.f32 %v724_v23, %v716_v22  ;;  %v1037_v23 = vld [vmem:[#allocation2 + $0x28] sm:$0xff] }
 0xa4c   :  { %2132 = vtanh.f32 %v2517_v24 }
 0xa55   :  { %v658_v27 = vpop.permute.xlu1 %657 }
 0xa56   :  { %v2133_v29 = vpop.eup %2132  ;;  %v2521_v30 = vadd.f32 %v658_v27, %v650_v25 }
 0xa57   :  { %729 = vrot.lane.b32.xlu0 %v2133_v29, %s2314_s2 }
 0xa58   :  { %2134 = vtanh.f32 %v2521_v30 }
 0xa62   :  { %v2135_v31 = vpop.eup %2134 }
 0xa63   :  { %663 = vrot.lane.b32.xlu1 %v2135_v31, %s2314_s2 }
 0xac9   :  { %v730_v32 = vpop.permute.xlu0 %729 }
 0xaca   :  { %v732_v33 = vmul.f32 %v2129_v14, %v730_v32 }
 0xacc   :  { %v733_v34 = vpack.c.bf16 %v732_v33, %v732_v33 }
 0xace   :  { %735 = vrot.lane.b32.xlu0 %v733_v34, %s2305_s22 }
 0xad5   :  { %v664_v36 = vpop.permute.xlu1 %663 }
 0xad6   :  { %v666_v37 = vmul.f32 %v2131_v17, %v664_v36 }
 0xad8   :  { %v780_v38 = vpack.c.bf16 %v666_v37, %v666_v37 }
 0xada   :  { %782 = vrot.lane.b32.xlu1 %v780_v38, %s2305_s22 }
 0xb40   :  { %v736_v39 = vpop.permute.xlu0 %735 }
 0xb41   :  { %1897 = vmatmul.mubr.msk.bf16.vlgmr.msra.gmra.mrb[12].mxu0 %vm88_vm1, %v736_v39  ;;  %1913 = vmatmul.mubr.msk.bf16.vlgmr.msra.gmra.mrb[16].mxu1 %vm88_vm1, %v736_v39 }
 0xb42   :  { %1901 = vmatpush3.bf16.msra.mxu0 %v2410_v26  ;;  %1904 = vmatprep.mubr.msk.bf16.mxu0 %vm2312_vm0, %v2311_v0 }
 0xb43   :  { %1902 = vmatprep.subr.bf16.mxu0 %v2311_v0  ;;  %1917 = vmatpush3.bf16.msra.mxu1 %v2400_v20 }
 0xb44   :  { %1918 = vmatprep.subr.bf16.mxu1 %v2311_v0  ;;  %1920 = vmatprep.mubr.msk.bf16.mxu1 %vm2312_vm0, %v2311_v0 }
 0xb46   :  { %1903 = vmatpush3.bf16.msra.mxu0 %v2415_v28 }
 0xb47   :  { %1932 = vmatprep.subr.bf16.mxu0 %v2311_v0  ;;  %1919 = vmatpush3.bf16.msra.mxu1 %v2403_v21 }
 0xb48   :  { %1924 = vmatprep.subr.bf16.mxu1 %v2311_v0 }
 0xb4c   :  { %v783_v40 = vpop.permute.xlu1 %782 }
 0xb4d   :  { %1905 = vmatmul.mubr.msk.bf16.vlgmr.msra.gmra.mrb[12].mxu0 %vm88_vm1, %v783_v40 }
 0xb4e   :  { %1933 = vmatpush3.bf16.msra.mxu0 %v2381_v1  ;;  %1936 = vmatprep.mubr.msk.bf16.mxu0 %vm2312_vm0, %v2311_v0 }
 0xb4f   :  { %1934 = vmatprep.subr.bf16.mxu0 %v2311_v0 }
 0xb52   :  { %1935 = vmatpush3.bf16.msra.mxu0 %v2384_v2 }
 0xb53   :  { %1940 = vmatprep.subr.bf16.mxu0 %v2311_v0 }
 0xc14   :  { %v887_v42 = vpop.f32.mrb[16].mxu1 }
 0xc15   :  { %v893_v43 = vadd.f32 %v887_v42, %v852_v41  ;;  %v1914_v44 = vpop.f32.mrb[17].mxu1 }
 0xc16   :  { %v890_v45 = vpop.f32.mrb[18].mxu1 }
 0xc17   :  { %2136 = vtanh.f32 %v893_v43  ;;  %v1915_v46 = vpop.f32.mrb[19].mxu1  ;;  %v1714_v54 = vmul.f32 -1.442695, %v893_v43 }
 0xc20   :  { %v821_v47 = vpop.f32.mrb[12].mxu0 }
 0xc21   :  { %v2137_v48 = vpop.eup %2136  ;;  %v2024_v49 = vadd.f32 %v2434_v35, %v821_v47  ;;  %v1906_v50 = vpop.f32.mrb[13].mxu0 }
 0xc22   :  { %v824_v51 = vpop.f32.mrb[14].mxu0  ;;  %903 = vrot.lane.b32.xlu0 %v2137_v48, %s2314_s2 }
 0xc23   :  { %2138 = vtanh.f32 %v2024_v49  ;;  %v1907_v52 = vpop.f32.mrb[15].mxu0  ;;  %v1712_v55 = vmul.f32 -1.442695, %v2024_v49 }
 0xc24   :  { %2140 = vpow2.f32 %v1714_v54 }
 0xc25   :  { %2142 = vpow2.f32 %v1712_v55 }
 0xc2d   :  { %v2139_v53 = vpop.eup %2138 }
 0xc2e   :  { %837 = vrot.lane.b32.xlu1 %v2139_v53, %s2314_s2  ;;  %v2141_v56 = vpop.eup %2140 }
 0xc2f   :  { %v897_v57 = vadd.f32 1.0, %v2141_v56  ;;  %v2143_v58 = vpop.eup %2142 }
 0xc30   :  { %v831_v59 = vadd.f32 1.0, %v2143_v58 }
 0xc31   :  { %2144 = vrcp.f32 %v897_v57 }
 0xc32   :  { %2146 = vrcp.f32 %v831_v59 }
 0xc3b   :  { %v2145_v60 = vpop.eup %2144 }
 0xc3c   :  { %v2147_v63 = vpop.eup %2146  ;;  %v901_v5 = vmul.f32 %v2145_v60, %v2517_v24 }
 0xc3d   :  { %v835_v8 = vmul.f32 %v2147_v63, %v2521_v30 }
 0xc94   :  { %v904_v61 = vpop.permute.xlu0 %903 }
 0xc95   :  { %v906_v62 = vmul.f32 %v2145_v60, %v904_v61 }
 0xc97   :  { %908 = vrot.lane.b32.xlu0 %v906_v62, %s2314_s2 }
 0xca0   :  { %v838_v3 = vpop.permute.xlu1 %837 }
 0xca1   :  { %v840_v4 = vmul.f32 %v2147_v63, %v838_v3 }
 0xca3   :  { %842 = vrot.lane.b32.xlu1 %v840_v4, %s2314_s2 }
 0xd09   :  { %v909_v6 = vpop.permute.xlu0 %908 }
 0xd0a   :  { %v2555_v7 = vadd.f32 %v909_v6, %v901_v5  ;;  %v1222_v6 = vld [vmem:[#allocation2 + $0x30] sm:$0xff] }
 0xd0c   :  { %2148 = vtanh.f32 %v2555_v7 }
 0xd15   :  { %v843_v9 = vpop.permute.xlu1 %842 }
 0xd16   :  { %v2149_v10 = vpop.eup %2148  ;;  %v2559_v11 = vadd.f32 %v843_v9, %v835_v8 }
 0xd17   :  { %914 = vrot.lane.b32.xlu0 %v2149_v10, %s2314_s2 }
 0xd18   :  { %2150 = vtanh.f32 %v2559_v11 }
 0xd22   :  { %v2151_v12 = vpop.eup %2150 }
 0xd23   :  { %848 = vrot.lane.b32.xlu1 %v2151_v12, %s2314_s2 }
 0xd89   :  { %v915_v13 = vpop.permute.xlu0 %914 }
 0xd8a   :  { %v917_v14 = vmul.f32 %v2145_v60, %v915_v13 }
 0xd8c   :  { %v918_v15 = vpack.c.bf16 %v917_v14, %v917_v14 }
 0xd8e   :  { %920 = vrot.lane.b32.xlu0 %v918_v15, %s2305_s22 }
 0xd95   :  { %v849_v16 = vpop.permute.xlu1 %848 }
 0xd96   :  { %v851_v17 = vmul.f32 %v2147_v63, %v849_v16 }
 0xd98   :  { %v965_v18 = vpack.c.bf16 %v851_v17, %v851_v17 }
 0xd9a   :  { %967 = vrot.lane.b32.xlu1 %v965_v18, %s2305_s22 }
 0xe00   :  { %v921_v19 = vpop.permute.xlu0 %920 }
 0xe01   :  { %1921 = vmatmul.mubr.msk.bf16.vlgmr.msra.gmra.mrb[20].mxu1 %vm88_vm1, %v921_v19  ;;  %1937 = vmatmul.mubr.msk.bf16.vlgmr.msra.gmra.mrb[16].mxu0 %vm88_vm1, %v921_v19 }
 0xe02   :  { %1925 = vmatpush3.bf16.msra.mxu1 %v2410_v26  ;;  %1928 = vmatprep.mubr.msk.bf16.mxu1 %vm2312_vm0, %v2311_v0 }
 0xe03   :  { %1926 = vmatprep.subr.bf16.mxu1 %v2311_v0  ;;  %1941 = vmatpush3.bf16.msra.mxu0 %v2400_v20 }
 0xe04   :  { %1942 = vmatprep.subr.bf16.mxu0 %v2311_v0  ;;  %1944 = vmatprep.mubr.msk.bf16.mxu0 %vm2312_vm0, %v2311_v0 }
 0xe06   :  { %1927 = vmatpush3.bf16.msra.mxu1 %v2415_v28 }
 0xe07   :  { %1956 = vmatprep.subr.bf16.mxu1 %v2311_v0  ;;  %1943 = vmatpush3.bf16.msra.mxu0 %v2403_v21 }
 0xe08   :  { %1948 = vmatprep.subr.bf16.mxu0 %v2311_v0 }
 0xe0c   :  { %v968_v22 = vpop.permute.xlu1 %967 }
 0xe0d   :  { %1929 = vmatmul.mubr.msk.bf16.vlgmr.msra.gmra.mrb[20].mxu1 %vm88_vm1, %v968_v22 }
 0xe0e   :  { %1957 = vmatpush3.bf16.msra.mxu1 %v2381_v1  ;;  %1960 = vmatprep.mubr.msk.bf16.mxu1 %vm2312_vm0, %v2311_v0 }
 0xe0f   :  { %1958 = vmatprep.subr.bf16.mxu1 %v2311_v0 }
 0xe12   :  { %1959 = vmatpush3.bf16.msra.mxu1 %v2384_v2 }
 0xe13   :  { %1964 = vmatprep.subr.bf16.mxu1 %v2311_v0 }
 0xed4   :  { %v1072_v24 = vpop.f32.mrb[16].mxu0 }
 0xed5   :  { %v1078_v25 = vadd.f32 %v1072_v24, %v1037_v23  ;;  %v1938_v27 = vpop.f32.mrb[17].mxu0 }
 0xed6   :  { %v1075_v29 = vpop.f32.mrb[18].mxu0 }
 0xed7   :  { %2152 = vtanh.f32 %v1078_v25  ;;  %v1939_v30 = vpop.f32.mrb[19].mxu0  ;;  %v1719_v39 = vmul.f32 -1.442695, %v1078_v25 }
 0xee0   :  { %v1006_v31 = vpop.f32.mrb[20].mxu1 }
 0xee1   :  { %v2153_v32 = vpop.eup %2152  ;;  %v2025_v33 = vadd.f32 %v2434_v35, %v1006_v31  ;;  %v1930_v34 = vpop.f32.mrb[21].mxu1 }
 0xee2   :  { %1088 = vrot.lane.b32.xlu0 %v2153_v32, %s2314_s2  ;;  %v1009_v36 = vpop.f32.mrb[22].mxu1 }
 0xee3   :  { %2154 = vtanh.f32 %v2025_v33  ;;  %v1931_v37 = vpop.f32.mrb[23].mxu1  ;;  %v1717_v40 = vmul.f32 -1.442695, %v2025_v33 }
 0xee4   :  { %2156 = vpow2.f32 %v1719_v39 }
 0xee5   :  { %2158 = vpow2.f32 %v1717_v40 }
 0xeed   :  { %v2155_v38 = vpop.eup %2154 }
 0xeee   :  { %1022 = vrot.lane.b32.xlu1 %v2155_v38, %s2314_s2  ;;  %v2157_v41 = vpop.eup %2156 }
 0xeef   :  { %v1082_v42 = vadd.f32 1.0, %v2157_v41  ;;  %v2159_v43 = vpop.eup %2158 }
 0xef0   :  { %v1016_v44 = vadd.f32 1.0, %v2159_v43 }
 0xef1   :  { %2160 = vrcp.f32 %v1082_v42 }
 0xef2   :  { %2162 = vrcp.f32 %v1016_v44 }
 0xefb   :  { %v2161_v45 = vpop.eup %2160 }
 0xefc   :  { %v2163_v48 = vpop.eup %2162  ;;  %v1086_v51 = vmul.f32 %v2161_v45, %v2555_v7 }
 0xefd   :  { %v1020_v54 = vmul.f32 %v2163_v48, %v2559_v11 }
 0xf54   :  { %v1089_v46 = vpop.permute.xlu0 %1088 }
 0xf55   :  { %v1091_v47 = vmul.f32 %v2161_v45, %v1089_v46 }
 0xf57   :  { %1093 = vrot.lane.b32.xlu0 %v1091_v47, %s2314_s2 }
 0xf60   :  { %v1023_v49 = vpop.permute.xlu1 %1022 }
 0xf61   :  { %v1025_v50 = vmul.f32 %v2163_v48, %v1023_v49 }
 0xf63   :  { %1027 = vrot.lane.b32.xlu1 %v1025_v50, %s2314_s2 }
 0xfc9   :  { %v1094_v52 = vpop.permute.xlu0 %1093 }
 0xfca   :  { %v2593_v53 = vadd.f32 %v1094_v52, %v1086_v51 }
 0xfcc   :  { %2164 = vtanh.f32 %v2593_v53 }
 0xfd5   :  { %v1028_v55 = vpop.permute.xlu1 %1027 }
 0xfd6   :  { %v2165_v56 = vpop.eup %2164  ;;  %v2597_v57 = vadd.f32 %v1028_v55, %v1020_v54 }
 0xfd7   :  { %1099 = vrot.lane.b32.xlu0 %v2165_v56, %s2314_s2 }
 0xfd8   :  { %2166 = vtanh.f32 %v2597_v57 }
 0xfe2   :  { %v2167_v58 = vpop.eup %2166 }
 0xfe3   :  { %1033 = vrot.lane.b32.xlu1 %v2167_v58, %s2314_s2 }
0x1049   :  { %v1100_v59 = vpop.permute.xlu0 %1099 }
0x104a   :  { %v1102_v60 = vmul.f32 %v2161_v45, %v1100_v59 }
0x104c   :  { %v1103_v61 = vpack.c.bf16 %v1102_v60, %v1102_v60 }
0x104e   :  { %1105 = vrot.lane.b32.xlu0 %v1103_v61, %s2305_s22 }
0x1055   :  { %v1034_v62 = vpop.permute.xlu1 %1033 }
0x1056   :  { %v1036_v63 = vmul.f32 %v2163_v48, %v1034_v62 }
0x1058   :  { %v1150_v3 = vpack.c.bf16 %v1036_v63, %v1036_v63 }
0x105a   :  { %1152 = vrot.lane.b32.xlu1 %v1150_v3, %s2305_s22 }
0x10c0   :  { %v1106_v4 = vpop.permute.xlu0 %1105 }
0x10c1   :  { %1945 = vmatmul.mubr.msk.bf16.vlgmr.msra.gmra.mrb[20].mxu0 %vm88_vm1, %v1106_v4  ;;  %1961 = vmatmul.mubr.msk.bf16.vlgmr.msra.gmra.mrb[24].mxu1 %vm88_vm1, %v1106_v4 }
0x10c2   :  { %1949 = vmatpush3.bf16.msra.mxu0 %v2410_v26  ;;  %1952 = vmatprep.mubr.msk.bf16.mxu0 %vm2312_vm0, %v2311_v0 }
0x10c3   :  { %1950 = vmatprep.subr.bf16.mxu0 %v2311_v0  ;;  %1965 = vmatpush3.bf16.msra.mxu1 %v2400_v20 }
0x10c4   :  { %1966 = vmatprep.subr.bf16.mxu1 %v2311_v0  ;;  %1968 = vmatprep.mubr.msk.bf16.mxu1 %vm2312_vm0, %v2311_v0 }
0x10c6   :  { %1951 = vmatpush3.bf16.msra.mxu0 %v2415_v28 }
0x10c7   :  { %1980 = vmatprep.subr.bf16.mxu0 %v2311_v0  ;;  %1967 = vmatpush3.bf16.msra.mxu1 %v2403_v21 }
0x10c8   :  { %1972 = vmatprep.subr.bf16.mxu1 %v2311_v0 }
0x10cc   :  { %v1153_v5 = vpop.permute.xlu1 %1152 }
0x10cd   :  { %1953 = vmatmul.mubr.msk.bf16.vlgmr.msra.gmra.mrb[20].mxu0 %vm88_vm1, %v1153_v5 }
0x10ce   :  { %1981 = vmatpush3.bf16.msra.mxu0 %v2381_v1  ;;  %1984 = vmatprep.mubr.msk.bf16.mxu0 %vm2312_vm0, %v2311_v0 }
0x10cf   :  { %1982 = vmatprep.subr.bf16.mxu0 %v2311_v0 }
0x10d2   :  { %1983 = vmatpush3.bf16.msra.mxu0 %v2384_v2 }
0x10d3   :  { %1988 = vmatprep.subr.bf16.mxu0 %v2311_v0 }
0x1194   :  { %v1257_v7 = vpop.f32.mrb[24].mxu1 }
0x1195   :  { %v1263_v8 = vadd.f32 %v1257_v7, %v1222_v6  ;;  %v1962_v9 = vpop.f32.mrb[25].mxu1 }
0x1196   :  { %v1260_v10 = vpop.f32.mrb[26].mxu1 }
0x1197   :  { %2168 = vtanh.f32 %v1263_v8  ;;  %v1963_v11 = vpop.f32.mrb[27].mxu1  ;;  %v1724_v17 = vmul.f32 -1.442695, %v1263_v8 }
0x11a0   :  { %v1191_v12 = vpop.f32.mrb[20].mxu0 }
0x11a1   :  { %v2169_v13 = vpop.eup %2168  ;;  %v2026_v1 = vadd.f32 %v2434_v35, %v1191_v12  ;;  %v1954_v14 = vpop.f32.mrb[21].mxu0 }
0x11a2   :  { %v1194_v15 = vpop.f32.mrb[22].mxu0  ;;  %1273 = vrot.lane.b32.xlu0 %v2169_v13, %s2314_s2 }
0x11a3   :  { %2170 = vtanh.f32 %v2026_v1  ;;  %v1955_v16 = vpop.f32.mrb[23].mxu0  ;;  %v1722_v18 = vmul.f32 -1.442695, %v2026_v1 }
0x11a4   :  { %2172 = vpow2.f32 %v1724_v17 }
0x11a5   :  { %2174 = vpow2.f32 %v1722_v18 }
0x11ad   :  { %v2171_v2 = vpop.eup %2170 }
0x11ae   :  { %1207 = vrot.lane.b32.xlu1 %v2171_v2, %s2314_s2  ;;  %v2173_v19 = vpop.eup %2172 }
0x11af   :  { %v1267_v22 = vadd.f32 1.0, %v2173_v19  ;;  %v2175_v23 = vpop.eup %2174 }
0x11b0   :  { %v1201_v24 = vadd.f32 1.0, %v2175_v23 }
0x11b1   :  { %2176 = vrcp.f32 %v1267_v22 }
0x11b2   :  { %2178 = vrcp.f32 %v1201_v24 }
0x11bb   :  { %v2177_v25 = vpop.eup %2176 }
0x11bc   :  { %v2179_v30 = vpop.eup %2178  ;;  %v1271_v33 = vmul.f32 %v2177_v25, %v2593_v53 }
0x11bd   :  { %v1205_v37 = vmul.f32 %v2179_v30, %v2597_v57 }
0x1214   :  { %v1274_v27 = vpop.permute.xlu0 %1273 }
0x1215   :  { %v1276_v29 = vmul.f32 %v2177_v25, %v1274_v27  ;;  %v2209_v27 = vld [vmem:[#allocation5 + $0x28] sm:$0xff]  }
0x1217   :  { %1278 = vrot.lane.b32.xlu0 %v1276_v29, %s2314_s2 }
0x1220   :  { %v1208_v31 = vpop.permute.xlu1 %1207 }
0x1221   :  { %v1210_v32 = vmul.f32 %v2179_v30, %v1208_v31 }
0x1223   :  { %1212 = vrot.lane.b32.xlu1 %v1210_v32, %s2314_s2 }
0x1289   :  { %v1279_v34 = vpop.permute.xlu0 %1278 }
0x128a   :  { %v2631_v36 = vadd.f32 %v1279_v34, %v1271_v33 }
0x128c   :  { %2180 = vtanh.f32 %v2631_v36 }
0x1295   :  { %v1213_v38 = vpop.permute.xlu1 %1212 }
0x1296   :  { %v2181_v39 = vpop.eup %2180  ;;  %v2635_v40 = vadd.f32 %v1213_v38, %v1205_v37 }
0x1297   :  { %1284 = vrot.lane.b32.xlu0 %v2181_v39, %s2314_s2 }
0x1298   :  { %2182 = vtanh.f32 %v2635_v40 }
0x12a2   :  { %v2183_v41 = vpop.eup %2182 }
0x12a3   :  { %1218 = vrot.lane.b32.xlu1 %v2183_v41, %s2314_s2 }
0x1309   :  { %v1285_v42 = vpop.permute.xlu0 %1284 }
0x130a   :  { %v1287_v43 = vmul.f32 %v2177_v25, %v1285_v42  ;;  %v2208_v25 = vld [vmem:[#allocation5 + $0x20] sm:$0xff]  }
0x130c   :  { %v1288_v44 = vpack.c.bf16 %v1287_v43, %v1287_v43 }
0x130e   :  { %1290 = vrot.lane.b32.xlu0 %v1288_v44, %s2305_s22  ;;  %v70_v44 = vld [vmem:[#allocation7 + $0x8] sm:$0xff] }
0x1315   :  { %v1219_v45 = vpop.permute.xlu1 %1218 }
0x1316   :  { %v1221_v46 = vmul.f32 %v2179_v30, %v1219_v45  ;;  %v71_v45 = vld [vmem:[#allocation7 + $0x10] sm:$0xff] }
0x1318   :  { %v1335_v47 = vpack.c.bf16 %v1221_v46, %v1221_v46  ;;  %v72_v46 = vld [vmem:[#allocation7 + $0x18] sm:$0xff] }
0x131a   :  { %1337 = vrot.lane.b32.xlu1 %v1335_v47, %s2305_s22  ;;  %v2315_v47 = vmov 0.0|0.0  }
0x1380   :  { %v1291_v48 = vpop.permute.xlu0 %1290 }
0x1381   :  { %1969 = vmatmul.mubr.msk.bf16.vlgmr.msra.gmra.mrb[28].mxu1 %vm88_vm1, %v1291_v48  ;;  %1985 = vmatmul.mubr.msk.bf16.vlgmr.msra.gmra.mrb[24].mxu0 %vm88_vm1, %v1291_v48  ;;  %v2016_v48 = vpack.c.bf16 %v71_v45, %v70_v44 }
0x1382   :  { %1973 = vmatpush3.bf16.msra.mxu1 %v2410_v26  ;;  %1976 = vmatprep.mubr.msk.bf16.mxu1 %vm2312_vm0, %v2311_v0  ;;  %v1407_v26 = vld [vmem:[#allocation2 + $0x38] sm:$0xff] }
0x1383   :  { %1974 = vmatprep.subr.bf16.mxu1 %v2311_v0  ;;  %1989 = vmatpush3.bf16.msra.mxu0 %v2400_v20 }
0x1384   :  { %1990 = vmatprep.subr.bf16.mxu0 %v2311_v0  ;;  %1992 = vmatprep.mubr.msk.bf16.mxu0 %vm2312_vm0, %v2311_v0 }
0x1386   :  { %1975 = vmatpush3.bf16.msra.mxu1 %v2415_v28 }
0x1387   :  { %1991 = vmatpush3.bf16.msra.mxu0 %v2403_v21  ;;  %2015 = vmatprep.subr.bf16.mxu1 %v2315_v47 }
0x1388   :  { %1996 = vmatprep.subr.bf16.mxu0 %v2311_v0 }
0x138c   :  { %v1338_v49 = vpop.permute.xlu1 %1337 }
0x138d   :  { %1977 = vmatmul.mubr.msk.bf16.vlgmr.msra.gmra.mrb[28].mxu1 %vm88_vm1, %v1338_v49  ;;  %v73_v49 = vld [vmem:[#allocation7 + $0x20] sm:$0xff] }
0x138e   :  { %2012 = vmatprep.mubr.msk.f32.mxu1 %vm2312_vm0, %v2311_v0  ;;  %2017 = vmatpush3.bf16.msra.mxu1 %v2016_v48 }
0x138f   :  { %2018 = vmatprep.subr.bf16.mxu1 %v2315_v47 }
0x1454   :  { %v1442_v50 = vpop.f32.mrb[24].mxu0 }
0x1455   :  { %v1448_v20 = vadd.f32 %v1442_v50, %v1407_v26  ;;  %v1986_v51 = vpop.f32.mrb[25].mxu0  ;;  %v2019_v26 = vpack.c.bf16 %v73_v49, %v72_v46 }
0x1456   :  { %v1445_v52 = vpop.f32.mrb[26].mxu0 }
0x1457   :  { %2184 = vtanh.f32 %v1448_v20  ;;  %v1987_v53 = vpop.f32.mrb[27].mxu0  ;;  %v1729_v59 = vmul.f32 -1.442695, %v1448_v20  ;;  %2020 = vmatpush3.bf16.msra.mxu1 %v2019_v26 }
0x1458   :  { %v1733_v53 = vld [vmem:[#allocation7 + $0x28] ss:$0 sm:$0xff] }
0x1460   :  { %v1376_v54 = vpop.f32.mrb[28].mxu1 }
0x1461   :  { %v2185_v55 = vpop.eup %2184  ;;  %v2027_v28 = vadd.f32 %v2434_v35, %v1376_v54  ;;  %v1978_v21 = vpop.f32.mrb[29].mxu1 }
0x1462   :  { %1458 = vrot.lane.b32.xlu0 %v2185_v55, %s2314_s2  ;;  %v1379_v56 = vpop.f32.mrb[30].mxu1 }
0x1463   :  { %2186 = vtanh.f32 %v2027_v28  ;;  %v1979_v57 = vpop.f32.mrb[31].mxu1  ;;  %v1727_v60 = vmul.f32 -1.442695, %v2027_v28 }
0x1464   :  { %2188 = vpow2.f32 %v1729_v59 }
0x1465   :  { %2190 = vpow2.f32 %v1727_v60 }
0x146d   :  { %v2187_v58 = vpop.eup %2186 }
0x146e   :  { %1392 = vrot.lane.b32.xlu1 %v2187_v58, %s2314_s2  ;;  %v2189_v61 = vpop.eup %2188 }
0x146f   :  { %v1452_v62 = vadd.f32 1.0, %v2189_v61  ;;  %v2191_v63 = vpop.eup %2190 }
0x1470   :  { %v1386_v3 = vadd.f32 1.0, %v2191_v63 }
0x1471   :  { %2192 = vrcp.f32 %v1452_v62 }
0x1472   :  { %2194 = vrcp.f32 %v1386_v3 }
0x147b   :  { %v2193_v4 = vpop.eup %2192 }
0x147c   :  { %v2195_v7 = vpop.eup %2194  ;;  %v1456_v10 = vmul.f32 %v2193_v4, %v2631_v36 }
0x147d   :  { %v1390_v13 = vmul.f32 %v2195_v7, %v2635_v40 }
0x14d4   :  { %v1459_v5 = vpop.permute.xlu0 %1458 }
0x14d5   :  { %v1461_v6 = vmul.f32 %v2193_v4, %v1459_v5 }
0x14d7   :  { %1463 = vrot.lane.b32.xlu0 %v1461_v6, %s2314_s2 }
0x14e0   :  { %v1393_v8 = vpop.permute.xlu1 %1392 }
0x14e1   :  { %v1395_v9 = vmul.f32 %v2195_v7, %v1393_v8 }
0x14e3   :  { %1397 = vrot.lane.b32.xlu1 %v1395_v9, %s2314_s2 }
0x1549   :  { %v1464_v11 = vpop.permute.xlu0 %1463 }
0x154a   :  { %v1466_v12 = vadd.f32 %v1464_v11, %v1456_v10 }
0x154c   :  { %2196 = vtanh.f32 %v1466_v12 }
0x1555   :  { %v1398_v1 = vpop.permute.xlu1 %1397 }
0x1556   :  { %v2197_v14 = vpop.eup %2196  ;;  %v1400_v15 = vadd.f32 %v1398_v1, %v1390_v13 }
0x1557   :  { %1469 = vrot.lane.b32.xlu0 %v2197_v14, %s2314_s2 }
0x1558   :  { %2198 = vtanh.f32 %v1400_v15 }
0x1562   :  { %v2199_v16 = vpop.eup %2198 }
0x1563   :  { %1403 = vrot.lane.b32.xlu1 %v2199_v16, %s2314_s2 }
0x15c9   :  { %v1470_v2 = vpop.permute.xlu0 %1469 }
0x15ca   :  { %v1472_v17 = vmul.f32 %v2193_v4, %v1470_v2 }
0x15cc   :  { %v1473_v18 = vpack.c.bf16 %v1472_v17, %v1472_v17 }
0x15ce   :  { %1475 = vrot.lane.b32.xlu0 %v1473_v18, %s2305_s22 }
0x15d5   :  { %v1404_v19 = vpop.permute.xlu1 %1403 }
0x15d6   :  { %v1406_v22 = vmul.f32 %v2195_v7, %v1404_v19 }
0x15d8   :  { %v1520_v23 = vpack.c.bf16 %v1406_v22, %v1406_v22 }
0x15da   :  { %1522 = vrot.lane.b32.xlu1 %v1520_v23, %s2305_s22 }
0x1640   :  { %v1476_v24 = vpop.permute.xlu0 %1475 }
0x1641   :  { %1993 = vmatmul.mubr.msk.bf16.vlgmr.msra.gmra.mrb[28].mxu0 %vm88_vm1, %v1476_v24 }
0x1642   :  { %1997 = vmatpush3.bf16.msra.mxu0 %v2208_v25  ;;  %2000 = vmatprep.mubr.msk.bf16.mxu0 %vm2312_vm0, %v2311_v0 }
0x1643   :  { %1998 = vmatprep.subr.bf16.mxu0 %v2311_v0 }
0x1646   :  { %1999 = vmatpush3.bf16.msra.mxu0 %v2209_v27 }
0x164c   :  { %v1523_v29 = vpop.permute.xlu1 %1522 }
0x164d   :  { %2001 = vmatmul.mubr.msk.bf16.vlgmr.msra.gmra.mrb[28].mxu0 %vm88_vm1, %v1523_v29 }
0x1720   :  { %v1561_v30 = vpop.f32.mrb[28].mxu0 }
0x1721   :  { %v2028_v31 = vadd.f32 %v2434_v35, %v1561_v30  ;;  %v2002_v32 = vpop.f32.mrb[29].mxu0 }
0x1722   :  { %v1564_v33 = vpop.f32.mrb[30].mxu0 }
0x1723   :  { %2200 = vtanh.f32 %v2028_v31  ;;  %v2003_v34 = vpop.f32.mrb[31].mxu0  ;;  %v1732_v37 = vmul.f32 -1.442695, %v2028_v31 }
0x1725   :  { %2202 = vpow2.f32 %v1732_v37 }
0x172d   :  { %v2201_v36 = vpop.eup %2200 }
0x172e   :  { %1577 = vrot.lane.b32.xlu0 %v2201_v36, %s2314_s2 }
0x172f   :  { %v2203_v38 = vpop.eup %2202 }
0x1730   :  { %v1571_v39 = vadd.f32 1.0, %v2203_v38 }
0x1732   :  { %2204 = vrcp.f32 %v1571_v39 }
0x173c   :  { %v2205_v0 = vpop.eup %2204 }
0x173d   :  { %v1575_v42 = vmul.f32 %v2205_v0, %v1400_v15 }
0x17a0   :  { %v1578_v40 = vpop.permute.xlu0 %1577 }
0x17a1   :  { %v1580_v41 = vmul.f32 %v2205_v0, %v1578_v40 }
0x17a3   :  { %1582 = vrot.lane.b32.xlu1 %v1580_v41, %s2314_s2 }
0x1815   :  { %v1583_v43 = vpop.permute.xlu1 %1582 }
0x1816   :  { %v1585_v35 = vadd.f32 %v1583_v43, %v1575_v42 }
0x1818   :  { %2206 = vtanh.f32 %v1585_v35 }
0x1822   :  { %v2207_v50 = vpop.eup %2206 }
0x1823   :  { %1588 = vrot.lane.b32.xlu0 %v2207_v50, %s2314_s2 }
0x1895   :  { %v1589_v20 = vpop.permute.xlu0 %1588 }
0x1896   :  { %v1591_v51 = vmul.f32 %v2205_v0, %v1589_v20 }
0x1898   :  { %1597 = vrot.lane.b32.xlu1 %v1591_v51, %s2305_s22 }
0x190a   :  { %v1598_v52 = vpop.permute.xlu1 %1597 }
0x190b   :  { %2013 = vmatmul.mubr.msk.f32.vlgmr.msra.gmra.mrb[32].mxu1 %vm88_vm1, %v1598_v52 }
0x19de   :  { %v1667_v54 = vpop.f32.mrb[32].mxu1 }
0x19df   :  { %v1668_v55 = vadd.f32 %v1733_v53, %v1667_v54  ;;  %v2014_v28 = vpop.f32.mrb[33].mxu1 }
0x19e1   :  { %1671 = vst [vmem:[#allocation8] sm:$0xff] %v1668_v55 }
0x19e2   :  { %2287 = shalt.err (!%p2284_p0)
}
0x19e3   :  { %s2288_s28 = scalar_lea.hbm %s2695_s3, 128 }
0x19e4   :  { %p2289_p1 = scmp.ne.s32.totalorder %s2695_s3, %s2288_s28  ;;  %p2292_p2 = scmp.lt.u32.totalorder %s2288_s28, %s2695_s3 }
0x19e6   :  { %p2294_p3 = pnand %p2292_p2, %p2289_p1 }
0x19e8   :  { %2297 = shalt.err (!%p2294_p3)
}
0x19e9   :  { %1681 = dma.vmem_to_hbm [thread:$0]  %s1679_s25, 128, %s2695_s3, [#allocation4]  }
0x19ea   :  { %2302 = dma.done.wait [#allocation4], 128  }
0x19eb   :  { %2303 = vsyncadd [#allocation4], 4294967168 }
0x19ec   :  { %1685 = vsyncpa [#allocation3], 1 }
0x19ed   :  { %1686 = vsyncpa [#allocation6], 1 }
0x19ee   :  { %1687 = vsyncpa [#allocation4], 1 }

</bundles_post_ra>
